<compile_context>
chip_gen: v6e
topology: v6e:2x2x1
jax: 0.10.0
libtpu: 0.0.40
codegen_flags: <defaults>
</compile_context>

<pallas_src>
import functools
from typing import NamedTuple

import jax
import jax.numpy as jnp
from jax.experimental import pallas as pl
from jax.experimental.pallas import tpu as pltpu


# ----------------------------------------------------------------------------
# Pallas kernel: y = relu(x @ w + b), tiled over the rows of x.
# ----------------------------------------------------------------------------
def _linear_relu_kernel(x_ref, w_ref, b_ref, o_ref):
    acc = jnp.dot(x_ref[...], w_ref[...], preferred_element_type=jnp.float32)
    acc = acc + b_ref[...]
    o_ref[...] = jnp.maximum(acc, 0.0).astype(o_ref.dtype)


def matmul_bias_relu(x, w, b, out_dtype, tm_max=512):
    """relu(x @ w + b).  x:[M,K], w:[K,N] (bf16), b:[1,N] (f32)."""
    M, K = x.shape
    _, N = w.shape
    x = x.astype(w.dtype)                       # bf16 MXU inputs
    tm = min(tm_max, M)                         # tm==M (full dim) or multiple of 8
    grid = (pl.cdiv(M, tm),)
    return pl.pallas_call(
        _linear_relu_kernel,
        grid=grid,
        in_specs=[
            pl.BlockSpec((tm, K), lambda i: (i, 0)),    # activations: tiled over M
            pl.BlockSpec((K, N), lambda i: (0, 0)),     # weights: resident
            pl.BlockSpec((1, N), lambda i: (0, 0)),     # bias: resident
        ],
        out_specs=pl.BlockSpec((tm, N), lambda i: (i, 0)),
        out_shape=jax.ShapeDtypeStruct((M, N), out_dtype),
        compiler_params=pltpu.CompilerParams(
            dimension_semantics=("parallel",)),         # megacore on v7x
    )(x, w, b)


# ----------------------------------------------------------------------------
# Static network configuration (never traced).
# ----------------------------------------------------------------------------
class ConvCfg(NamedTuple):
    cin: int
    cout: int
    k: int
    s: int
    p: int
    use_s2d: bool


def build_config(input_shape):
    C, H, W = input_shape            # only channel 0 is used -> conv1 Cin = 1
    specs = [(1, 32, 8, 4, 2), (32, 64, 3, 2, 1), (64, 64, 3, 1, 1), (64, 64, 3, 1, 1)]
    convs = []
    h, w = H, W
    for cin, cout, k, s, p in specs:
        use_s2d = (s > 1 and k % s == 0
                   and (h + 2 * p) % s == 0 and (w + 2 * p) % s == 0)
        convs.append(ConvCfg(cin, cout, k, s, p, use_s2d))
        h = (h + 2 * p - k) // s + 1
        w = (w + 2 * p - k) // s + 1
    fc_size = 64 * (H // 8) * (W // 8)
    assert fc_size == 64 * h * w, "spatial shape mismatch with torch fc_size"
    return dict(convs=tuple(convs), fc_size=fc_size, feat_hw=(h, w))


# ----------------------------------------------------------------------------
# im2col glue (plain JAX slicing; static k/s/p so it traces cleanly).
# ----------------------------------------------------------------------------
def im2col(x, k, s, p):
    """x:[N,H,W,C] -> patches [N,OH,OW,k*k*C] with (kh, kw, cin) inner layout."""
    N, H, W, C = x.shape
    xp = jnp.pad(x, ((0, 0), (p, p), (p, p), (0, 0)))
    OH = (H + 2 * p - k) // s + 1
    OW = (W + 2 * p - k) // s + 1
    cols = []
    for i in range(k):
        for j in range(k):
            cols.append(xp[:, i:i + s * (OH - 1) + 1:s, j:j + s * (OW - 1) + 1:s, :])
    return jnp.concatenate(cols, axis=-1), OH, OW


def im2col_s2d(x, k, s, p):
    """Space-to-depth im2col for k % s == 0 (conv1: k=8, s=4).

    Patch duplication is (k/s)^2 = 4x instead of k^2 = 64x.
    Inner layout is (di, dj, r, c, cin); weights are permuted at init to match.
    """
    N, H, W, C = x.shape
    xp = jnp.pad(x, ((0, 0), (p, p), (p, p), (0, 0)))
    Hp, Wp = H + 2 * p, W + 2 * p
    nbh, nbw = Hp // s, Wp // s
    kb = k // s
    OH, OW = nbh - kb + 1, nbw - kb + 1
    sd = xp.reshape(N, nbh, s, nbw, s, C)
    sd = jnp.transpose(sd, (0, 1, 3, 2, 4, 5)).reshape(N, nbh, nbw, s * s * C)
    cols = []
    for di in range(kb):
        for dj in range(kb):
            cols.append(sd[:, di:di + OH, dj:dj + OW, :])
    return jnp.concatenate(cols, axis=-1), OH, OW


# ----------------------------------------------------------------------------
# Parameter init (orthogonal, gain sqrt(2); biases zero), weights pre-laid-out.
# ----------------------------------------------------------------------------
def orthogonal_init(key, rows, cols, gain):
    a = jax.random.normal(key, (max(rows, cols), min(rows, cols)), jnp.float32)
    q, r = jnp.linalg.qr(a)
    q = q * jnp.sign(jnp.diagonal(r))
    if rows < cols:
        q = q.T
    return gain * q[:rows, :cols]


def init_params(key, cfg):
    gain = 2.0 ** 0.5
    conv_cfgs = cfg["convs"]
    keys = jax.random.split(key, len(conv_cfgs) + 1)
    convs, ref_conv_w = [], []
    for kk, lc in zip(keys[:-1], conv_cfgs):
        w = orthogonal_init(kk, lc.cout, lc.cin * lc.k * lc.k, gain)
        w = w.reshape(lc.cout, lc.cin, lc.k, lc.k)            # torch OIHW layout
        ref_conv_w.append(w)
        if lc.use_s2d:
            kb = lc.k // lc.s
            wm = w.reshape(lc.cout, lc.cin, kb, lc.s, kb, lc.s)
            wm = jnp.transpose(wm, (2, 4, 3, 5, 1, 0)).reshape(-1, lc.cout)
        else:
            wm = jnp.transpose(w, (2, 3, 1, 0)).reshape(lc.k * lc.k * lc.cin, lc.cout)
        convs.append(dict(w_mat=wm.astype(jnp.bfloat16),
                          b=jnp.zeros((1, lc.cout), jnp.float32)))
    fc_size = cfg["fc_size"]
    Hf, Wf = cfg["feat_hw"]
    Cf = 64
    fc_w = orthogonal_init(keys[-1], 256, fc_size, gain)       # torch [out, in(NCHW)]
    fc_w_nhwc = jnp.transpose(fc_w.reshape(256, Cf, Hf, Wf), (0, 2, 3, 1))
    fc_w_nhwc = fc_w_nhwc.reshape(256, fc_size)                # columns in NHWC order
    return dict(
        convs=convs,
        fc_w_mat=fc_w_nhwc.T.astype(jnp.bfloat16),
        fc_b=jnp.zeros((1, 256), jnp.float32),
        # f32 torch-layout copies, only used by the reference check:
        ref_conv_w=ref_conv_w,
        ref_fc_w=fc_w,
    )


# ----------------------------------------------------------------------------
# Forward pass
# ----------------------------------------------------------------------------
def cnn_forward(x_img, params, cfg):
    """x_img: [N, H, W, 1] -> embeddings [N, 256] (f32)."""
    h = x_img.astype(jnp.bfloat16)
    for lp, lc in zip(params["convs"], cfg["convs"]):
        if lc.use_s2d:
            patches, OH, OW = im2col_s2d(h, lc.k, lc.s, lc.p)
        else:
            patches, OH, OW = im2col(h, lc.k, lc.s, lc.p)
        N = patches.shape[0]
        Kdim = patches.shape[-1]
        y = matmul_bias_relu(patches.reshape(N * OH * OW, Kdim),
                             lp["w_mat"], lp["b"], jnp.bfloat16)
        h = y.reshape(N, OH, OW, -1)
    # NHWC flatten; NCHW (torch Flatten) ordering was folded into fc_w columns.
    N = h.shape[0]
    feat = h.reshape(N, -1)
    return matmul_bias_relu(feat, params["fc_w_mat"], params["fc_b"], jnp.float32)


def model_forward(x, params, cfg):
    """x: [2, B, C, H, W] -> dist: [B]."""
    xa = x[0, :, 0, :, :][..., None]                  # [B, H, W, 1]
    xb = x[1, :, 0, :, :][..., None]
    both = jnp.concatenate([xa, xb], axis=0)          # single CNN pass over 2B images
    feats = cnn_forward(both, params, cfg)            # [2B, 256] f32
    B = xa.shape[0]
    fa, fb = feats[:B], feats[B:]
    d = fa - fb
    # Trivial 256-wide reduction: left to XLA per perf review (a (B,1) Pallas
    # output would force masked lane-width-1 stores).
    return jnp.mean(d * d, axis=1)


# ----------------------------------------------------------------------------
# Pure-JAX reference (same bf16 quantization points) for a sanity check.
# ----------------------------------------------------------------------------
def reference_forward(x, params, cfg):
    def cnn_ref(img):
        h = img.astype(jnp.bfloat16)
        for w, lp, lc in zip(params["ref_conv_w"], params["convs"], cfg["convs"]):
            w_hwio = jnp.transpose(w, (2, 3, 1, 0)).astype(jnp.bfloat16)
            y = jax.lax.conv_general_dilated(
                h, w_hwio, (lc.s, lc.s), [(lc.p, lc.p), (lc.p, lc.p)],
                dimension_numbers=("NHWC", "HWIO", "NHWC"),
                preferred_element_type=jnp.float32)
            h = jnp.maximum(y + lp["b"], 0.0).astype(jnp.bfloat16)
        N = h.shape[0]
        feat = jnp.transpose(h, (0, 3, 1, 2)).reshape(N, -1)   # torch NCHW flatten
        fc_w = params["ref_fc_w"].astype(jnp.bfloat16)
        y = jnp.dot(feat, fc_w.T, preferred_element_type=jnp.float32)
        return jnp.maximum(y + params["fc_b"], 0.0)

    fa = cnn_ref(x[0, :, 0, :, :][..., None])
    fb = cnn_ref(x[1, :, 0, :, :][..., None])
    return ((fa - fb) ** 2).mean(axis=1)


# ----------------------------------------------------------------------------
if __name__ == "__main__":
    B, C, H, W = 2, 4, 32, 32          # input_shape = (C, H, W); fc_size = 64*4*4
    cfg = build_config((C, H, W))
    params = init_params(jax.random.PRNGKey(42), cfg)

    x = jax.random.normal(jax.random.PRNGKey(0), (2, B, C, H, W), jnp.float32)

    fwd = jax.jit(functools.partial(model_forward, cfg=cfg))
    dist = jax.block_until_ready(fwd(x, params))

    ref_fwd = jax.jit(functools.partial(reference_forward, cfg=cfg))
    ref = jax.block_until_ready(ref_fwd(x, params))

    assert dist.shape == (B,), dist.shape
    # bf16 matmul inputs / f32 accumulation: same quantization points in kernel
    # and reference; only accumulation-order differences remain.
    assert jnp.allclose(dist, ref, rtol=2e-2, atol=1e-3), (dist, ref)

    print("KERNEL_OK")
</pallas_src>

<mosaic_0001>
module attributes {stable_mosaic.version = 11 : i64} {
  func.func @_linear_relu_kernel(%arg0: i32, %arg1: memref<256x64xbf16, #tpu.memory_space<vmem>>, %arg2: memref<64x32xbf16, #tpu.memory_space<vmem>>, %arg3: memref<1x32xf32, #tpu.memory_space<vmem>>, %arg4: memref<256x32xbf16, #tpu.memory_space<vmem>>) attributes {dimension_semantics = [#tpu.dimension_semantics<parallel>], iteration_bounds = array<i64: 1>, scalar_prefetch = 0 : i64, scratch_operands = 0 : i64, tpu.core_type = #tpu.core_type<tc>, window_params = [{transform_indices = @transform_0, window_bounds = array<i64: 256, 64>}, {pipeline_mode = #tpu.pipeline_mode<synchronous>, transform_indices = @transform_1, window_bounds = array<i64: 64, 32>}, {pipeline_mode = #tpu.pipeline_mode<synchronous>, transform_indices = @transform_2, window_bounds = array<i64: 1, 32>}, {transform_indices = @transform_3, window_bounds = array<i64: 256, 32>}]} {
    %c0 = arith.constant 0 : index
    %c0_0 = arith.constant 0 : index
    %0 = vector.load %arg1[%c0, %c0_0] : memref<256x64xbf16, #tpu.memory_space<vmem>>, vector<256x64xbf16>
    %c0_1 = arith.constant 0 : index
    %c0_2 = arith.constant 0 : index
    %1 = vector.load %arg2[%c0_1, %c0_2] : memref<64x32xbf16, #tpu.memory_space<vmem>>, vector<64x32xbf16>
    %cst = arith.constant dense<0.000000e+00> : vector<256x32xf32>
    %2 = tpu.matmul %0, %1, %cst {dimension_numbers = #tpu.dot_dimension_numbers<[1], [0], [0], [1], [0, 0, 1, 1], [], []>} : vector<256x64xbf16>, vector<64x32xbf16>, vector<256x32xf32> -> vector<256x32xf32>
    %c0_3 = arith.constant 0 : index
    %c0_4 = arith.constant 0 : index
    %3 = vector.load %arg3[%c0_3, %c0_4] : memref<1x32xf32, #tpu.memory_space<vmem>>, vector<1x32xf32>
    %4 = vector.broadcast %3 : vector<1x32xf32> to vector<256x32xf32>
    %5 = arith.addf %2, %4 : vector<256x32xf32>
    %cst_5 = arith.constant 0.000000e+00 : f32
    %6 = vector.broadcast %cst_5 : f32 to vector<256x32xf32>
    %7 = arith.maximumf %5, %6 : vector<256x32xf32>
    %8 = arith.truncf %7 : vector<256x32xf32> to vector<256x32xbf16>
    %c0_6 = arith.constant 0 : index
    %c0_7 = arith.constant 0 : index
    %9 = vector.load %arg4[%c0_6, %c0_7] : memref<256x32xbf16, #tpu.memory_space<vmem>>, vector<256x32xbf16>
    tpu.vector_store %arg4[%c0_6, %c0_7], %8 {strides = array<i32>} : memref<256x32xbf16, #tpu.memory_space<vmem>>, vector<256x32xbf16>,
    return
  }
  func.func @transform_0(%arg0: i32) -> (i32, i32) {
    %c0_i32 = arith.constant 0 : i32
    %c0_i32_0 = arith.constant 0 : i32
    return %arg0, %c0_i32 : i32, i32
  }
  func.func @transform_1(%arg0: i32) -> (i32, i32) {
    %c0_i32 = arith.constant 0 : i32
    %c0_i32_0 = arith.constant 0 : i32
    %c0_i32_1 = arith.constant 0 : i32
    return %c0_i32, %c0_i32_0 : i32, i32
  }
  func.func @transform_2(%arg0: i32) -> (i32, i32) {
    %c0_i32 = arith.constant 0 : i32
    %c0_i32_0 = arith.constant 0 : i32
    %c0_i32_1 = arith.constant 0 : i32
    return %c0_i32, %c0_i32_0 : i32, i32
  }
  func.func @transform_3(%arg0: i32) -> (i32, i32) {
    %c0_i32 = arith.constant 0 : i32
    %c0_i32_0 = arith.constant 0 : i32
    return %arg0, %c0_i32 : i32, i32
  }
}

module attributes {stable_mosaic.version = 11 : i64} {
  func.func @_linear_relu_kernel(%arg0: i32, %arg1: memref<64x288xbf16, #tpu.memory_space<vmem>>, %arg2: memref<288x64xbf16, #tpu.memory_space<vmem>>, %arg3: memref<1x64xf32, #tpu.memory_space<vmem>>, %arg4: memref<64x64xbf16, #tpu.memory_space<vmem>>) attributes {dimension_semantics = [#tpu.dimension_semantics<parallel>], iteration_bounds = array<i64: 1>, scalar_prefetch = 0 : i64, scratch_operands = 0 : i64, tpu.core_type = #tpu.core_type<tc>, window_params = [{transform_indices = @transform_0, window_bounds = array<i64: 64, 288>}, {pipeline_mode = #tpu.pipeline_mode<synchronous>, transform_indices = @transform_1, window_bounds = array<i64: 288, 64>}, {pipeline_mode = #tpu.pipeline_mode<synchronous>, transform_indices = @transform_2, window_bounds = array<i64: 1, 64>}, {transform_indices = @transform_3, window_bounds = array<i64: 64, 64>}]} {
    %c0 = arith.constant 0 : index
    %c0_0 = arith.constant 0 : index
    %0 = vector.load %arg1[%c0, %c0_0] : memref<64x288xbf16, #tpu.memory_space<vmem>>, vector<64x288xbf16>
    %c0_1 = arith.constant 0 : index
    %c0_2 = arith.constant 0 : index
    %1 = vector.load %arg2[%c0_1, %c0_2] : memref<288x64xbf16, #tpu.memory_space<vmem>>, vector<288x64xbf16>
    %cst = arith.constant dense<0.000000e+00> : vector<64x64xf32>
    %2 = tpu.matmul %0, %1, %cst {dimension_numbers = #tpu.dot_dimension_numbers<[1], [0], [0], [1], [0, 0, 1, 1], [], []>} : vector<64x288xbf16>, vector<288x64xbf16>, vector<64x64xf32> -> vector<64x64xf32>
    %c0_3 = arith.constant 0 : index
    %c0_4 = arith.constant 0 : index
    %3 = vector.load %arg3[%c0_3, %c0_4] : memref<1x64xf32, #tpu.memory_space<vmem>>, vector<1x64xf32>
    %4 = vector.broadcast %3 : vector<1x64xf32> to vector<64x64xf32>
    %5 = arith.addf %2, %4 : vector<64x64xf32>
    %cst_5 = arith.constant 0.000000e+00 : f32
    %6 = vector.broadcast %cst_5 : f32 to vector<64x64xf32>
    %7 = arith.maximumf %5, %6 : vector<64x64xf32>
    %8 = arith.truncf %7 : vector<64x64xf32> to vector<64x64xbf16>
    %c0_6 = arith.constant 0 : index
    %c0_7 = arith.constant 0 : index
    %9 = vector.load %arg4[%c0_6, %c0_7] : memref<64x64xbf16, #tpu.memory_space<vmem>>, vector<64x64xbf16>
    tpu.vector_store %arg4[%c0_6, %c0_7], %8 {strides = array<i32>} : memref<64x64xbf16, #tpu.memory_space<vmem>>, vector<64x64xbf16>,
    return
  }
  func.func @transform_0(%arg0: i32) -> (i32, i32) {
    %c0_i32 = arith.constant 0 : i32
    %c0_i32_0 = arith.constant 0 : i32
    return %arg0, %c0_i32 : i32, i32
  }
  func.func @transform_1(%arg0: i32) -> (i32, i32) {
    %c0_i32 = arith.constant 0 : i32
    %c0_i32_0 = arith.constant 0 : i32
    %c0_i32_1 = arith.constant 0 : i32
    return %c0_i32, %c0_i32_0 : i32, i32
  }
  func.func @transform_2(%arg0: i32) -> (i32, i32) {
    %c0_i32 = arith.constant 0 : i32
    %c0_i32_0 = arith.constant 0 : i32
    %c0_i32_1 = arith.constant 0 : i32
    return %c0_i32, %c0_i32_0 : i32, i32
  }
  func.func @transform_3(%arg0: i32) -> (i32, i32) {
    %c0_i32 = arith.constant 0 : i32
    %c0_i32_0 = arith.constant 0 : i32
    return %arg0, %c0_i32 : i32, i32
  }
}

module attributes {stable_mosaic.version = 11 : i64} {
  func.func @_linear_relu_kernel(%arg0: i32, %arg1: memref<64x576xbf16, #tpu.memory_space<vmem>>, %arg2: memref<576x64xbf16, #tpu.memory_space<vmem>>, %arg3: memref<1x64xf32, #tpu.memory_space<vmem>>, %arg4: memref<64x64xbf16, #tpu.memory_space<vmem>>) attributes {dimension_semantics = [#tpu.dimension_semantics<parallel>], iteration_bounds = array<i64: 1>, scalar_prefetch = 0 : i64, scratch_operands = 0 : i64, tpu.core_type = #tpu.core_type<tc>, window_params = [{transform_indices = @transform_0, window_bounds = array<i64: 64, 576>}, {pipeline_mode = #tpu.pipeline_mode<synchronous>, transform_indices = @transform_1, window_bounds = array<i64: 576, 64>}, {pipeline_mode = #tpu.pipeline_mode<synchronous>, transform_indices = @transform_2, window_bounds = array<i64: 1, 64>}, {transform_indices = @transform_3, window_bounds = array<i64: 64, 64>}]} {
    %c0 = arith.constant 0 : index
    %c0_0 = arith.constant 0 : index
    %0 = vector.load %arg1[%c0, %c0_0] : memref<64x576xbf16, #tpu.memory_space<vmem>>, vector<64x576xbf16>
    %c0_1 = arith.constant 0 : index
    %c0_2 = arith.constant 0 : index
    %1 = vector.load %arg2[%c0_1, %c0_2] : memref<576x64xbf16, #tpu.memory_space<vmem>>, vector<576x64xbf16>
    %cst = arith.constant dense<0.000000e+00> : vector<64x64xf32>
    %2 = tpu.matmul %0, %1, %cst {dimension_numbers = #tpu.dot_dimension_numbers<[1], [0], [0], [1], [0, 0, 1, 1], [], []>} : vector<64x576xbf16>, vector<576x64xbf16>, vector<64x64xf32> -> vector<64x64xf32>
    %c0_3 = arith.constant 0 : index
    %c0_4 = arith.constant 0 : index
    %3 = vector.load %arg3[%c0_3, %c0_4] : memref<1x64xf32, #tpu.memory_space<vmem>>, vector<1x64xf32>
    %4 = vector.broadcast %3 : vector<1x64xf32> to vector<64x64xf32>
    %5 = arith.addf %2, %4 : vector<64x64xf32>
    %cst_5 = arith.constant 0.000000e+00 : f32
    %6 = vector.broadcast %cst_5 : f32 to vector<64x64xf32>
    %7 = arith.maximumf %5, %6 : vector<64x64xf32>
    %8 = arith.truncf %7 : vector<64x64xf32> to vector<64x64xbf16>
    %c0_6 = arith.constant 0 : index
    %c0_7 = arith.constant 0 : index
    %9 = vector.load %arg4[%c0_6, %c0_7] : memref<64x64xbf16, #tpu.memory_space<vmem>>, vector<64x64xbf16>
    tpu.vector_store %arg4[%c0_6, %c0_7], %8 {strides = array<i32>} : memref<64x64xbf16, #tpu.memory_space<vmem>>, vector<64x64xbf16>,
    return
  }
  func.func @transform_0(%arg0: i32) -> (i32, i32) {
    %c0_i32 = arith.constant 0 : i32
    %c0_i32_0 = arith.constant 0 : i32
    return %arg0, %c0_i32 : i32, i32
  }
  func.func @transform_1(%arg0: i32) -> (i32, i32) {
    %c0_i32 = arith.constant 0 : i32
    %c0_i32_0 = arith.constant 0 : i32
    %c0_i32_1 = arith.constant 0 : i32
    return %c0_i32, %c0_i32_0 : i32, i32
  }
  func.func @transform_2(%arg0: i32) -> (i32, i32) {
    %c0_i32 = arith.constant 0 : i32
    %c0_i32_0 = arith.constant 0 : i32
    %c0_i32_1 = arith.constant 0 : i32
    return %c0_i32, %c0_i32_0 : i32, i32
  }
  func.func @transform_3(%arg0: i32) -> (i32, i32) {
    %c0_i32 = arith.constant 0 : i32
    %c0_i32_0 = arith.constant 0 : i32
    return %arg0, %c0_i32 : i32, i32
  }
}

module attributes {stable_mosaic.version = 11 : i64} {
  func.func @_linear_relu_kernel(%arg0: i32, %arg1: memref<4x1024xbf16, #tpu.memory_space<vmem>>, %arg2: memref<1024x256xbf16, #tpu.memory_space<vmem>>, %arg3: memref<1x256xf32, #tpu.memory_space<vmem>>, %arg4: memref<4x256xf32, #tpu.memory_space<vmem>>) attributes {dimension_semantics = [#tpu.dimension_semantics<parallel>], iteration_bounds = array<i64: 1>, scalar_prefetch = 0 : i64, scratch_operands = 0 : i64, tpu.core_type = #tpu.core_type<tc>, window_params = [{transform_indices = @transform_0, window_bounds = array<i64: 4, 1024>}, {pipeline_mode = #tpu.pipeline_mode<synchronous>, transform_indices = @transform_1, window_bounds = array<i64: 1024, 256>}, {pipeline_mode = #tpu.pipeline_mode<synchronous>, transform_indices = @transform_2, window_bounds = array<i64: 1, 256>}, {transform_indices = @transform_3, window_bounds = array<i64: 4, 256>}]} {
    %c0 = arith.constant 0 : index
    %c0_0 = arith.constant 0 : index
    %0 = vector.load %arg1[%c0, %c0_0] : memref<4x1024xbf16, #tpu.memory_space<vmem>>, vector<4x1024xbf16>
    %c0_1 = arith.constant 0 : index
    %c0_2 = arith.constant 0 : index
    %1 = vector.load %arg2[%c0_1, %c0_2] : memref<1024x256xbf16, #tpu.memory_space<vmem>>, vector<1024x256xbf16>
    %cst = arith.constant dense<0.000000e+00> : vector<4x256xf32>
    %2 = tpu.matmul %0, %1, %cst {dimension_numbers = #tpu.dot_dimension_numbers<[1], [0], [0], [1], [0, 0, 1, 1], [], []>} : vector<4x1024xbf16>, vector<1024x256xbf16>, vector<4x256xf32> -> vector<4x256xf32>
    %c0_3 = arith.constant 0 : index
    %c0_4 = arith.constant 0 : index
    %3 = vector.load %arg3[%c0_3, %c0_4] : memref<1x256xf32, #tpu.memory_space<vmem>>, vector<1x256xf32>
    %4 = vector.broadcast %3 : vector<1x256xf32> to vector<4x256xf32>
    %5 = arith.addf %2, %4 : vector<4x256xf32>
    %cst_5 = arith.constant 0.000000e+00 : f32
    %6 = vector.broadcast %cst_5 : f32 to vector<4x256xf32>
    %7 = arith.maximumf %5, %6 : vector<4x256xf32>
    %c0_6 = arith.constant 0 : index
    %c0_7 = arith.constant 0 : index
    %8 = vector.load %arg4[%c0_6, %c0_7] : memref<4x256xf32, #tpu.memory_space<vmem>>, vector<4x256xf32>
    tpu.vector_store %arg4[%c0_6, %c0_7], %7 {strides = array<i32>} : memref<4x256xf32, #tpu.memory_space<vmem>>, vector<4x256xf32>,
    return
  }
  func.func @transform_0(%arg0: i32) -> (i32, i32) {
    %c0_i32 = arith.constant 0 : i32
    %c0_i32_0 = arith.constant 0 : i32
    return %arg0, %c0_i32 : i32, i32
  }
  func.func @transform_1(%arg0: i32) -> (i32, i32) {
    %c0_i32 = arith.constant 0 : i32
    %c0_i32_0 = arith.constant 0 : i32
    %c0_i32_1 = arith.constant 0 : i32
    return %c0_i32, %c0_i32_0 : i32, i32
  }
  func.func @transform_2(%arg0: i32) -> (i32, i32) {
    %c0_i32 = arith.constant 0 : i32
    %c0_i32_0 = arith.constant 0 : i32
    %c0_i32_1 = arith.constant 0 : i32
    return %c0_i32, %c0_i32_0 : i32, i32
  }
  func.func @transform_3(%arg0: i32) -> (i32, i32) {
    %c0_i32 = arith.constant 0 : i32
    %c0_i32_0 = arith.constant 0 : i32
    return %arg0, %c0_i32 : i32, i32
  }
}

</mosaic_0001>

<bundles_post_ra>
// kernel: model_forward.5
= control target key start
LH: loop header
LB: loop body
LE: loop exit
PB: predicated region body
PF: predicated region fallthrough
CT: control target
= control target key end

     0   :  { %vm166_vm0 = vcmask 523264   ;;  %vm536_vm1 = vcmask 257024   ;;  %s1023_s1 = inlined_call_operand.vmem [shape: bf16[64,32], index: 1, kind: input, shape index: {}]   ;;  %s1024_s0 = inlined_call_operand.vmem [shape: bf16[256,64], index: 0, kind: input, shape index: {}]   ;;  %s1025_s2 = inlined_call_operand.vmem [shape: f32[1,32], index: 2, kind: input, shape index: {}]   ;;  %s1026_s3 = inlined_call_operand.vmem [shape: bf16[256,32], index: 3, kind: output, shape index: {}]  }
   0x1   :  { %v742_v0 = vld [vmem:[%s1023_s1 + $0x18] sm:$0xff]   ;;  %v743_v1 = vld [vmem:[%s1023_s1 + $0x10] sm:$0xff]   ;;  %v744_v2 = vld [vmem:[%s1023_s1 + $0x8] sm:$0xff]  }
   0x2   :  { %694 = vmatprep.subr.bf16.mxu0 %v742_v0  ;;  %734 = vmatprep.subr.bf16.mxu1 %v742_v0  ;;  %v746_v3 = vld [vmem:[%s1024_s0] sm:$0xff]   ;;  %v748_v6 = vld [vmem:[%s1024_s0 + $0x8] sm:$0xff]   ;;  %v750_v8 = vld [vmem:[%s1024_s0 + $0x10] sm:$0xff]  }
   0x3   :  { %695 = vmatpush3.bf16.msra.mxu0 %v742_v0  ;;  %738 = vmatpush3.bf16.msra.mxu1 %v742_v0  ;;  %v747_v4 = vld [vmem:[%s1024_s0 + $0x40] sm:$0xff]   ;;  %v749_v7 = vld [vmem:[%s1024_s0 + $0x48] sm:$0xff]   ;;  %v751_v9 = vld [vmem:[%s1024_s0 + $0x50] sm:$0xff]  }
   0x4   :  { %696 = vmatprep.subr.bf16.mxu0 %v743_v1  ;;  %735 = vmatprep.subr.bf16.mxu1 %v743_v1  ;;  %v745_v5 = vld [vmem:[%s1023_s1] sm:$0xff]   ;;  %v752_v10 = vld [vmem:[%s1024_s0 + $0x18] sm:$0xff]   ;;  %v756_v14 = vld [vmem:[%s1024_s0 + $0x28] sm:$0xff]  }
   0x5   :  { %702 = vmatprep.mubr.msk.bf16.mxu0 %vm166_vm0, %v746_v3  ;;  %718 = vmatprep.mubr.msk.bf16.mxu1 %vm166_vm0, %v747_v4  ;;  %v753_v11 = vld [vmem:[%s1024_s0 + $0x58] sm:$0xff]   ;;  %v754_v12 = vld [vmem:[%s1024_s0 + $0x20] sm:$0xff]   ;;  %v757_v15 = vld [vmem:[%s1024_s0 + $0x68] sm:$0xff]  }
   0x6   :  { %v755_v13 = vld [vmem:[%s1024_s0 + $0x60] sm:$0xff]   ;;  %v758_v16 = vld [vmem:[%s1024_s0 + $0x30] sm:$0xff]   ;;  %v760_v18 = vld [vmem:[%s1024_s0 + $0x38] sm:$0xff]  }
   0x7   :  { %697 = vmatpush3.bf16.msra.mxu0 %v743_v1  ;;  %739 = vmatpush3.bf16.msra.mxu1 %v743_v1  ;;  %v759_v17 = vld [vmem:[%s1024_s0 + $0x70] sm:$0xff]   ;;  %v761_v19 = vld [vmem:[%s1024_s0 + $0x78] sm:$0xff]   ;;  %v861_v20 = vld [vmem:[%s1025_s2] ss:$0 sm:$0xff] }
   0x8   :  { %698 = vmatprep.subr.bf16.mxu0 %v744_v2  ;;  %736 = vmatprep.subr.bf16.mxu1 %v744_v2 }
   0xb   :  { %699 = vmatpush3.bf16.msra.mxu0 %v744_v2  ;;  %740 = vmatpush3.bf16.msra.mxu1 %v744_v2 }
   0xc   :  { %700 = vmatprep.subr.bf16.mxu0 %v745_v5  ;;  %737 = vmatprep.subr.bf16.mxu1 %v745_v5 }
   0xf   :  { %701 = vmatpush3.bf16.msra.mxu0 %v745_v5  ;;  %741 = vmatpush3.bf16.msra.mxu1 %v745_v5 }
  0x12   :  { %703 = vmatmul.mubr.msk.bf16.vlgmr.msra.gmra.mxu0 %vm166_vm0, %v748_v6  ;;  %719 = vmatmul.mubr.msk.bf16.vlgmr.msra.gmra.mxu1 %vm166_vm0, %v749_v7 }
  0x13   :  { %706 = vmatprep.mubr.msk.bf16.mxu0 %vm166_vm0, %v750_v8  ;;  %722 = vmatprep.mubr.msk.bf16.mxu1 %vm166_vm0, %v751_v9 }
  0x1a   :  { %707 = vmatmul.mubr.msk.bf16.gmra.mxu0 %vm166_vm0, %v752_v10  ;;  %723 = vmatmul.mubr.msk.bf16.gmra.mxu1 %vm166_vm0, %v753_v11 }
  0x1b   :  { %710 = vmatprep.mubr.msk.bf16.mxu0 %vm166_vm0, %v754_v12  ;;  %726 = vmatprep.mubr.msk.bf16.mxu1 %vm166_vm0, %v755_v13 }
  0x22   :  { %711 = vmatmul.mubr.msk.bf16.gmra.mxu0 %vm166_vm0, %v756_v14  ;;  %727 = vmatmul.mubr.msk.bf16.gmra.mxu1 %vm166_vm0, %v757_v15 }
  0x23   :  { %714 = vmatprep.mubr.msk.bf16.mxu0 %vm166_vm0, %v758_v16  ;;  %730 = vmatprep.mubr.msk.bf16.mxu1 %vm166_vm0, %v759_v17 }
  0x2a   :  { %715 = vmatmul.mubr.msk.bf16.gmra.mxu0 %vm166_vm0, %v760_v18  ;;  %731 = vmatmul.mubr.msk.bf16.gmra.mxu1 %vm166_vm0, %v761_v19 }
  0xd2   :  { %v704_v21 = vpop.f32.mrf.mxu0  ;;  %v720_v22 = vpop.f32.mrf.mxu1 }
  0xd3   :  { %v258_v23 = vadd.f32 %v704_v21, %v861_v20  ;;  %v322_v24 = vadd.f32 %v720_v22, %v861_v20 }
  0xd4   :  { %v249_v25 = vpop.f32.mrf.mxu0  ;;  %v313_v26 = vpop.f32.mrf.mxu1 }
  0xd5   :  { %v378_v27 = vmax.f32 %v258_v23, 0.0  ;;  %v394_v28 = vmax.f32 %v322_v24, 0.0  ;;  %v250_v29 = vadd.f32 %v861_v20, %v249_v25  ;;  %v314_v30 = vadd.f32 %v861_v20, %v313_v26 }
  0xd6   :  { %v705_v31 = vpop.f32.mrf.mxu0  ;;  %v721_v32 = vpop.f32.mrf.mxu1 }
  0xd7   :  { %v644_v33 = vpack.c.bf16 %v378_v27, %v378_v27  ;;  %v660_v34 = vpack.c.bf16 %v394_v28, %v394_v28  ;;  %v376_v35 = vmax.f32 %v250_v29, 0.0  ;;  %v392_v36 = vmax.f32 %v314_v30, 0.0 }
  0xd8   :  { %v261_v37 = vadd.f32 %v705_v31, %v861_v20  ;;  %v325_v38 = vadd.f32 %v721_v32, %v861_v20  ;;  %v252_v39 = vpop.f32.mrf.mxu0  ;;  %v316_v40 = vpop.f32.mrf.mxu1 }
  0xd9   :  { %539 = vst.msk [vmem:[%s1026_s3 + $0x8] sm:$0xf] %vm536_vm1, %v644_v33  ;;  %555 = vst.msk [vmem:[%s1026_s3 + $0x48] sm:$0xf] %vm536_vm1, %v660_v34  ;;  %v642_v41 = vpack.c.bf16 %v376_v35, %v376_v35  ;;  %v658_v42 = vpack.c.bf16 %v392_v36, %v392_v36  ;;  %v253_v43 = vadd.f32 %v861_v20, %v252_v39 }
  0xda   :  { %v317_v44 = vadd.f32 %v861_v20, %v316_v40  ;;  %v379_v45 = vmax.f32 %v261_v37, 0.0  ;;  %v395_v46 = vmax.f32 %v325_v38, 0.0  ;;  %v708_v47 = vpop.f32.mrf.mxu0  ;;  %v724_v48 = vpop.f32.mrf.mxu1 }
  0xdb   :  { %537 = vst.msk [vmem:[%s1026_s3] sm:$0xf] %vm536_vm1, %v642_v41  ;;  %553 = vst.msk [vmem:[%s1026_s3 + $0x40] sm:$0xf] %vm536_vm1, %v658_v42  ;;  %v377_v49 = vmax.f32 %v253_v43, 0.0  ;;  %v274_v51 = vadd.f32 %v708_v47, %v861_v20  ;;  %v338_v52 = vadd.f32 %v724_v48, %v861_v20 }
  0xdc   :  { %v393_v50 = vmax.f32 %v317_v44, 0.0  ;;  %v645_v53 = vpack.c.bf16 %v379_v45, %v379_v45  ;;  %v661_v54 = vpack.c.bf16 %v395_v46, %v395_v46  ;;  %v265_v55 = vpop.f32.mrf.mxu0  ;;  %v329_v56 = vpop.f32.mrf.mxu1 }
  0xdd   :  { %v643_v57 = vpack.c.bf16 %v377_v49, %v377_v49  ;;  %v382_v59 = vmax.f32 %v274_v51, 0.0  ;;  %v398_v60 = vmax.f32 %v338_v52, 0.0  ;;  %v266_v61 = vadd.f32 %v861_v20, %v265_v55 }
  0xde   :  { %v659_v58 = vpack.c.bf16 %v393_v50, %v393_v50  ;;  %540 = vst.msk [vmem:[%s1026_s3 + $0xc] sm:$0xf] %vm536_vm1, %v645_v53  ;;  %556 = vst.msk [vmem:[%s1026_s3 + $0x4c] sm:$0xf] %vm536_vm1, %v661_v54  ;;  %v330_v62 = vadd.f32 %v861_v20, %v329_v56  ;;  %v709_v63 = vpop.f32.mrf.mxu0  ;;  %v725_v0 = vpop.f32.mrf.mxu1 }
  0xdf   :  { %538 = vst.msk [vmem:[%s1026_s3 + $0x4] sm:$0xf] %vm536_vm1, %v643_v57  ;;  %v648_v1 = vpack.c.bf16 %v382_v59, %v382_v59  ;;  %v664_v2 = vpack.c.bf16 %v398_v60, %v398_v60  ;;  %v277_v3 = vadd.f32 %v709_v63, %v861_v20  ;;  %v341_v4 = vadd.f32 %v725_v0, %v861_v20 }
  0xe0   :  { %554 = vst.msk [vmem:[%s1026_s3 + $0x44] sm:$0xf] %vm536_vm1, %v659_v58  ;;  %v380_v5 = vmax.f32 %v266_v61, 0.0  ;;  %v396_v6 = vmax.f32 %v330_v62, 0.0  ;;  %v268_v7 = vpop.f32.mrf.mxu0  ;;  %v332_v8 = vpop.f32.mrf.mxu1 }
  0xe1   :  { %543 = vst.msk [vmem:[%s1026_s3 + $0x18] sm:$0xf] %vm536_vm1, %v648_v1  ;;  %559 = vst.msk [vmem:[%s1026_s3 + $0x58] sm:$0xf] %vm536_vm1, %v664_v2  ;;  %v383_v9 = vmax.f32 %v277_v3, 0.0  ;;  %v399_v10 = vmax.f32 %v341_v4, 0.0  ;;  %v269_v11 = vadd.f32 %v861_v20, %v268_v7  ;;  %v333_v12 = vadd.f32 %v861_v20, %v332_v8 }
  0xe2   :  { %v646_v13 = vpack.c.bf16 %v380_v5, %v380_v5  ;;  %v662_v14 = vpack.c.bf16 %v396_v6, %v396_v6  ;;  %v712_v15 = vpop.f32.mrf.mxu0  ;;  %v728_v16 = vpop.f32.mrf.mxu1 }
  0xe3   :  { %v649_v17 = vpack.c.bf16 %v383_v9, %v383_v9  ;;  %v665_v18 = vpack.c.bf16 %v399_v10, %v399_v10  ;;  %v381_v19 = vmax.f32 %v269_v11, 0.0  ;;  %v397_v21 = vmax.f32 %v333_v12, 0.0 }
  0xe4   :  { %541 = vst.msk [vmem:[%s1026_s3 + $0x10] sm:$0xf] %vm536_vm1, %v646_v13  ;;  %557 = vst.msk [vmem:[%s1026_s3 + $0x50] sm:$0xf] %vm536_vm1, %v662_v14  ;;  %v290_v22 = vadd.f32 %v712_v15, %v861_v20  ;;  %v354_v23 = vadd.f32 %v728_v16, %v861_v20  ;;  %v281_v24 = vpop.f32.mrf.mxu0  ;;  %v345_v25 = vpop.f32.mrf.mxu1 }
  0xe5   :  { %544 = vst.msk [vmem:[%s1026_s3 + $0x1c] sm:$0xf] %vm536_vm1, %v649_v17  ;;  %560 = vst.msk [vmem:[%s1026_s3 + $0x5c] sm:$0xf] %vm536_vm1, %v665_v18  ;;  %v647_v26 = vpack.c.bf16 %v381_v19, %v381_v19  ;;  %v663_v27 = vpack.c.bf16 %v397_v21, %v397_v21  ;;  %v282_v28 = vadd.f32 %v861_v20, %v281_v24 }
  0xe6   :  { %v346_v29 = vadd.f32 %v861_v20, %v345_v25  ;;  %v386_v30 = vmax.f32 %v290_v22, 0.0  ;;  %v402_v31 = vmax.f32 %v354_v23, 0.0  ;;  %v713_v32 = vpop.f32.mrf.mxu0  ;;  %v729_v33 = vpop.f32.mrf.mxu1 }
  0xe7   :  { %542 = vst.msk [vmem:[%s1026_s3 + $0x14] sm:$0xf] %vm536_vm1, %v647_v26  ;;  %558 = vst.msk [vmem:[%s1026_s3 + $0x54] sm:$0xf] %vm536_vm1, %v663_v27  ;;  %v384_v34 = vmax.f32 %v282_v28, 0.0  ;;  %v293_v36 = vadd.f32 %v713_v32, %v861_v20  ;;  %v357_v37 = vadd.f32 %v729_v33, %v861_v20 }
  0xe8   :  { %v400_v35 = vmax.f32 %v346_v29, 0.0  ;;  %v652_v38 = vpack.c.bf16 %v386_v30, %v386_v30  ;;  %v668_v39 = vpack.c.bf16 %v402_v31, %v402_v31  ;;  %v284_v40 = vpop.f32.mrf.mxu0  ;;  %v348_v41 = vpop.f32.mrf.mxu1 }
  0xe9   :  { %v650_v42 = vpack.c.bf16 %v384_v34, %v384_v34  ;;  %v387_v44 = vmax.f32 %v293_v36, 0.0  ;;  %v403_v45 = vmax.f32 %v357_v37, 0.0  ;;  %v285_v46 = vadd.f32 %v861_v20, %v284_v40 }
  0xea   :  { %v666_v43 = vpack.c.bf16 %v400_v35, %v400_v35  ;;  %547 = vst.msk [vmem:[%s1026_s3 + $0x28] sm:$0xf] %vm536_vm1, %v652_v38  ;;  %563 = vst.msk [vmem:[%s1026_s3 + $0x68] sm:$0xf] %vm536_vm1, %v668_v39  ;;  %v349_v47 = vadd.f32 %v861_v20, %v348_v41  ;;  %v716_v48 = vpop.f32.mrf.mxu0  ;;  %v732_v49 = vpop.f32.mrf.mxu1 }
  0xeb   :  { %545 = vst.msk [vmem:[%s1026_s3 + $0x20] sm:$0xf] %vm536_vm1, %v650_v42  ;;  %v653_v50 = vpack.c.bf16 %v387_v44, %v387_v44  ;;  %v669_v51 = vpack.c.bf16 %v403_v45, %v403_v45  ;;  %v306_v52 = vadd.f32 %v716_v48, %v861_v20  ;;  %v370_v53 = vadd.f32 %v732_v49, %v861_v20 }
  0xec   :  { %561 = vst.msk [vmem:[%s1026_s3 + $0x60] sm:$0xf] %vm536_vm1, %v666_v43  ;;  %v385_v54 = vmax.f32 %v285_v46, 0.0  ;;  %v401_v55 = vmax.f32 %v349_v47, 0.0  ;;  %v297_v56 = vpop.f32.mrf.mxu0  ;;  %v361_v57 = vpop.f32.mrf.mxu1 }
  0xed   :  { %548 = vst.msk [vmem:[%s1026_s3 + $0x2c] sm:$0xf] %vm536_vm1, %v653_v50  ;;  %564 = vst.msk [vmem:[%s1026_s3 + $0x6c] sm:$0xf] %vm536_vm1, %v669_v51  ;;  %v390_v58 = vmax.f32 %v306_v52, 0.0  ;;  %v406_v59 = vmax.f32 %v370_v53, 0.0  ;;  %v298_v60 = vadd.f32 %v861_v20, %v297_v56  ;;  %v362_v61 = vadd.f32 %v861_v20, %v361_v57 }
  0xee   :  { %v651_v62 = vpack.c.bf16 %v385_v54, %v385_v54  ;;  %v667_v63 = vpack.c.bf16 %v401_v55, %v401_v55  ;;  %v717_v0 = vpop.f32.mrf.mxu0  ;;  %v733_v1 = vpop.f32.mrf.mxu1 }
  0xef   :  { %v656_v2 = vpack.c.bf16 %v390_v58, %v390_v58  ;;  %v672_v3 = vpack.c.bf16 %v406_v59, %v406_v59  ;;  %v388_v4 = vmax.f32 %v298_v60, 0.0  ;;  %v404_v5 = vmax.f32 %v362_v61, 0.0 }
  0xf0   :  { %546 = vst.msk [vmem:[%s1026_s3 + $0x24] sm:$0xf] %vm536_vm1, %v651_v62  ;;  %562 = vst.msk [vmem:[%s1026_s3 + $0x64] sm:$0xf] %vm536_vm1, %v667_v63  ;;  %v309_v6 = vadd.f32 %v717_v0, %v861_v20  ;;  %v373_v7 = vadd.f32 %v733_v1, %v861_v20  ;;  %v300_v8 = vpop.f32.mrf.mxu0  ;;  %v364_v9 = vpop.f32.mrf.mxu1 }
  0xf1   :  { %551 = vst.msk [vmem:[%s1026_s3 + $0x38] sm:$0xf] %vm536_vm1, %v656_v2  ;;  %567 = vst.msk [vmem:[%s1026_s3 + $0x78] sm:$0xf] %vm536_vm1, %v672_v3  ;;  %v654_v10 = vpack.c.bf16 %v388_v4, %v388_v4  ;;  %v670_v11 = vpack.c.bf16 %v404_v5, %v404_v5  ;;  %v301_v12 = vadd.f32 %v861_v20, %v300_v8 }
  0xf2   :  { %v365_v13 = vadd.f32 %v861_v20, %v364_v9  ;;  %v391_v14 = vmax.f32 %v309_v6, 0.0  ;;  %v407_v15 = vmax.f32 %v373_v7, 0.0 }
  0xf3   :  { %549 = vst.msk [vmem:[%s1026_s3 + $0x30] sm:$0xf] %vm536_vm1, %v654_v10  ;;  %565 = vst.msk [vmem:[%s1026_s3 + $0x70] sm:$0xf] %vm536_vm1, %v670_v11  ;;  %v389_v16 = vmax.f32 %v301_v12, 0.0 }
  0xf4   :  { %v405_v17 = vmax.f32 %v365_v13, 0.0  ;;  %v657_v18 = vpack.c.bf16 %v391_v14, %v391_v14  ;;  %v673_v19 = vpack.c.bf16 %v407_v15, %v407_v15 }
  0xf5   :  { %v655_v21 = vpack.c.bf16 %v389_v16, %v389_v16 }
  0xf6   :  { %v671_v22 = vpack.c.bf16 %v405_v17, %v405_v17  ;;  %552 = vst.msk [vmem:[%s1026_s3 + $0x3c] sm:$0xf] %vm536_vm1, %v657_v18  ;;  %568 = vst.msk [vmem:[%s1026_s3 + $0x7c] sm:$0xf] %vm536_vm1, %v673_v19 }
  0xf7   :  { %550 = vst.msk [vmem:[%s1026_s3 + $0x34] sm:$0xf] %vm536_vm1, %v655_v21 }
  0xf8   :  { %566 = vst.msk [vmem:[%s1026_s3 + $0x74] sm:$0xf] %vm536_vm1, %v671_v22 }

// kernel: model_forward.6
= control target key start
LH: loop header
LB: loop body
LE: loop exit
PB: predicated region body
PF: predicated region fallthrough
CT: control target
= control target key end

     0   :  { %vm242_vm0 = vcmask 261120   ;;  %vm425_vm1 = vcmask 519168   ;;  %s746_s1 = inlined_call_operand.vmem [shape: bf16[288,64], index: 1, kind: input, shape index: {}]   ;;  %s747_s0 = inlined_call_operand.vmem [shape: bf16[64,288], index: 0, kind: input, shape index: {}]   ;;  %s748_s2 = inlined_call_operand.vmem [shape: f32[1,64], index: 2, kind: input, shape index: {}]   ;;  %s749_s3 = inlined_call_operand.vmem [shape: bf16[64,64], index: 3, kind: output, shape index: {}]  }
   0x1   :  { %v563_v0 = vld [vmem:[%s746_s1 + $0x78] sm:$0xff]   ;;  %v565_v2 = vld [vmem:[%s746_s1 + $0x70] sm:$0xff]   ;;  %v567_v4 = vld [vmem:[%s746_s1 + $0x68] sm:$0xff]  }
   0x2   :  { %v564_v1 = vld [vmem:[%s746_s1 + $0x38] sm:$0xff]   ;;  %489 = vmatprep.subr.bf16.mxu0 %v563_v0  ;;  %547 = vmatprep.subr.bf16.mxu1 %v563_v0  ;;  %v566_v3 = vld [vmem:[%s746_s1 + $0x30] sm:$0xff]   ;;  %v568_v5 = vld [vmem:[%s746_s1 + $0x28] sm:$0xff]  }
   0x3   :  { %490 = vmatpush3.bf16.msra.mxu0 %v564_v1  ;;  %555 = vmatpush3.bf16.msra.mxu1 %v564_v1  ;;  %v569_v6 = vld [vmem:[%s746_s1 + $0x60] sm:$0xff]   ;;  %v571_v8 = vld [vmem:[%s746_s1 + $0x58] sm:$0xff]   ;;  %v573_v10 = vld [vmem:[%s746_s1 + $0x50] sm:$0xff]  }
   0x4   :  { %491 = vmatprep.subr.bf16.mxu0 %v565_v2  ;;  %548 = vmatprep.subr.bf16.mxu1 %v565_v2  ;;  %v570_v7 = vld [vmem:[%s746_s1 + $0x20] sm:$0xff]   ;;  %v572_v9 = vld [vmem:[%s746_s1 + $0x18] sm:$0xff]   ;;  %v574_v13 = vld [vmem:[%s746_s1 + $0x10] sm:$0xff]  }
   0x5   :  { %v581_v11 = vld [vmem:[%s747_s0 + $0x4] ss:$12 sps:$4 sm:$0xff]   ;;  %v584_v12 = vld [vmem:[%s747_s0 + $0x4c] ss:$12 sps:$4 sm:$0xff]   ;;  %v582_v20 = vld [vmem:[%s747_s0 + $0x48] ss:$12 sps:$4 sm:$0xff]  }
   0x6   :  { %v575_v14 = vld [vmem:[%s746_s1 + $0x48] sm:$0xff]   ;;  %287 = vmatprep.mubr.bf16.mxu0 %v581_v11  ;;  %311 = vmatprep.mubr.bf16.mxu1 %v584_v12  ;;  %v577_v16 = vld [vmem:[%s746_s1 + $0x40] sm:$0xff]   ;;  %v595_v28 = vld [vmem:[%s747_s0 + $0x30] ss:$12 sps:$4 sm:$0xff]  }
   0x7   :  { %492 = vmatpush3.bf16.msra.mxu0 %v566_v3  ;;  %556 = vmatpush3.bf16.msra.mxu1 %v566_v3  ;;  %v576_v15 = vld [vmem:[%s746_s1 + $0x8] sm:$0xff]   ;;  %v578_v17 = vld [vmem:[%s746_s1] sm:$0xff]   ;;  %v596_v29 = vld [vmem:[%s747_s0 + $0x50] ss:$12 sps:$4 sm:$0xff]  }
   0x8   :  { %493 = vmatprep.subr.bf16.mxu0 %v567_v4  ;;  %549 = vmatprep.subr.bf16.mxu1 %v567_v4  ;;  %v585_v18 = vld [vmem:[%s746_s1 + $0x88] sm:$0xff]   ;;  %v586_v22 = vld [vmem:[%s746_s1 + $0x80] sm:$0xff]  }
   0x9   :  { %v579_v19 = vld [vmem:[%s747_s0] ss:$12 sps:$4 sm:$0xff]   ;;  %v587_v21 = vld [vmem:[%s747_s0 + $0x1c] ss:$12 sps:$4 sm:$0xff]   ;;  %v590_v24 = vld [vmem:[%s747_s0 + $0x18] ss:$12 sps:$4 sm:$0xff]  }
   0xa   :  { %v589_v23 = vld [vmem:[%s747_s0 + $0x8] ss:$12 sps:$4 sm:$0xff]   ;;  %v591_v25 = vld [vmem:[%s747_s0 + $0x20] ss:$12 sps:$4 sm:$0xff]   ;;  %v594_v27 = vld [vmem:[%s747_s0 + $0x38] ss:$12 sps:$4 sm:$0xff]  }
   0xb   :  { %494 = vmatpush3.bf16.msra.mxu0 %v568_v5  ;;  %557 = vmatpush3.bf16.msra.mxu1 %v568_v5  ;;  %v592_v26 = vld [vmem:[%s747_s0 + $0x34] ss:$12 sps:$4 sm:$0xff]  }
   0xc   :  { %495 = vmatprep.subr.bf16.mxu0 %v569_v6  ;;  %550 = vmatprep.subr.bf16.mxu1 %v569_v6  ;;  %v438_v39 = vld [vmem:[%s748_s2] ss:$0 sm:$0xff] }
   0xf   :  { %496 = vmatpush3.bf16.msra.mxu0 %v570_v7  ;;  %558 = vmatpush3.bf16.msra.mxu1 %v570_v7 }
  0x10   :  { %497 = vmatprep.subr.bf16.mxu0 %v571_v8  ;;  %551 = vmatprep.subr.bf16.mxu1 %v571_v8 }
  0x13   :  { %498 = vmatpush3.bf16.msra.mxu0 %v572_v9  ;;  %559 = vmatpush3.bf16.msra.mxu1 %v572_v9 }
  0x14   :  { %499 = vmatprep.subr.bf16.mxu0 %v573_v10  ;;  %552 = vmatprep.subr.bf16.mxu1 %v573_v10 }
  0x17   :  { %500 = vmatpush3.bf16.msra.mxu0 %v574_v13  ;;  %560 = vmatpush3.bf16.msra.mxu1 %v574_v13 }
  0x18   :  { %501 = vmatprep.subr.bf16.mxu0 %v575_v14  ;;  %553 = vmatprep.subr.bf16.mxu1 %v575_v14 }
  0x1b   :  { %502 = vmatpush3.bf16.msra.mxu0 %v576_v15  ;;  %561 = vmatpush3.bf16.msra.mxu1 %v576_v15 }
  0x1c   :  { %503 = vmatprep.subr.bf16.mxu0 %v577_v16  ;;  %554 = vmatprep.subr.bf16.mxu1 %v577_v16 }
  0x1f   :  { %504 = vmatpush3.bf16.msra.mxu0 %v578_v17  ;;  %562 = vmatpush3.bf16.msra.mxu1 %v578_v17 }
  0x20   :  { %535 = vmatprep.subr.bf16.mxu1 %v585_v18 }
  0x22   :  { %288 = vmatmul.mubr.bf16.vlgmr.msra.gmra.mxu0 %v579_v19  ;;  %312 = vmatmul.mubr.bf16.vlgmr.msra.gmra.mxu1 %v582_v20 }
  0x23   :  { %536 = vmatpush3.bf16.msra.mxu1 %v585_v18  ;;  %295 = vmatprep.mubr.bf16.mxu0 %v587_v21 }
  0x24   :  { %537 = vmatprep.subr.bf16.mxu1 %v586_v22  ;;  %539 = vmatprep.mubr.msk.bf16.mxu1 %vm242_vm0, %v589_v23 }
  0x27   :  { %538 = vmatpush3.bf16.msra.mxu1 %v586_v22 }
  0x2a   :  { %296 = vmatmul.mubr.bf16.gmra.mxu0 %v590_v24  ;;  %540 = vmatmul.mubr.msk.bf16.vlgmr.msra.gmra.mxu1 %vm242_vm0, %v591_v25 }
  0x2b   :  { %303 = vmatprep.mubr.bf16.mxu0 %v592_v26  ;;  %543 = vmatprep.mubr.msk.bf16.mxu1 %vm242_vm0, %v594_v27 }
  0x32   :  { %304 = vmatmul.mubr.bf16.gmra.mxu0 %v595_v28  ;;  %544 = vmatmul.mubr.msk.bf16.gmra.mxu1 %vm242_vm0, %v596_v29 }
  0xe2   :  { %v505_v30 = vpop.f32.mrf.mxu0  ;;  %v523_v31 = vpop.f32.mrf.mxu1 }
  0xe4   :  { %v506_v32 = vpop.f32.mrf.mxu0  ;;  %v524_v33 = vpop.f32.mrf.mxu1 }
  0xe5   :  { %v507_v36 = vadd.f32 %v506_v32, %v505_v30  ;;  %v525_v44 = vadd.f32 %v524_v33, %v523_v31 }
  0xe6   :  { %v508_v34 = vpop.f32.mrf.mxu0  ;;  %v526_v35 = vpop.f32.mrf.mxu1 }
  0xe7   :  { %v290_v43 = vadd.f32 %v507_v36, %v438_v39  ;;  %v314_v57 = vadd.f32 %v525_v44, %v438_v39 }
  0xe8   :  { %v509_v37 = vpop.f32.mrf.mxu0  ;;  %v527_v38 = vpop.f32.mrf.mxu1 }
  0xe9   :  { %v510_v42 = vadd.f32 %v509_v37, %v508_v34  ;;  %v528_v54 = vadd.f32 %v527_v38, %v526_v35 }
  0xea   :  { %v511_v40 = vpop.f32.mrf.mxu0  ;;  %v541_v41 = vpop.f32.mrf.mxu1 }
  0xeb   :  { %v293_v53 = vadd.f32 %v510_v42, %v438_v39  ;;  %v317_v6 = vadd.f32 %v528_v54, %v438_v39 }
  0xec   :  { %v512_v45 = vpop.f32.mrf.mxu0  ;;  %v354_v46 = vpop.f32.mrf.mxu1 }
  0xed   :  { %v513_v47 = vadd.f32 %v512_v45, %v511_v40  ;;  %v355_v48 = vadd.f32 %v354_v46, %v290_v43 }
  0xee   :  { %v514_v49 = vpop.f32.mrf.mxu0  ;;  %v542_v50 = vpop.f32.mrf.mxu1 }
  0xef   :  { %v298_v51 = vadd.f32 %v513_v47, %v438_v39  ;;  %v385_v52 = vmax.f32 %v355_v48, 0.0 }
  0xf0   :  { %v515_v55 = vpop.f32.mrf.mxu0  ;;  %v357_v56 = vpop.f32.mrf.mxu1 }
  0xf1   :  { %v363_v58 = vadd.f32 %v541_v41, %v298_v51  ;;  %v481_v59 = vpack.c.bf16 %v385_v52, %v385_v52  ;;  %v516_v60 = vadd.f32 %v515_v55, %v514_v49  ;;  %v358_v61 = vadd.f32 %v357_v56, %v293_v53 }
  0xf2   :  { %v517_v62 = vpop.f32.mrf.mxu0  ;;  %v545_v63 = vpop.f32.mrf.mxu1 }
  0xf3   :  { %v387_v0 = vmax.f32 %v363_v58, 0.0  ;;  %426 = vst.msk [vmem:[%s749_s3] sm:$0xf] %vm425_vm1, %v481_v59  ;;  %v301_v1 = vadd.f32 %v516_v60, %v438_v39  ;;  %v386_v2 = vmax.f32 %v358_v61, 0.0  ;;  %v379_v3 = vadd.f32 %v545_v63, %v314_v57 }
  0xf4   :  { %v518_v4 = vpop.f32.mrf.mxu0  ;;  %v370_v5 = vpop.f32.mrf.mxu1 }
  0xf5   :  { %v483_v7 = vpack.c.bf16 %v387_v0, %v387_v0  ;;  %v366_v8 = vadd.f32 %v542_v50, %v301_v1  ;;  %v482_v9 = vpack.c.bf16 %v386_v2, %v386_v2  ;;  %v391_v10 = vmax.f32 %v379_v3, 0.0 }
  0xf6   :  { %v519_v11 = vadd.f32 %v518_v4, %v517_v62  ;;  %v520_v12 = vpop.f32.mrf.mxu0  ;;  %v546_v13 = vpop.f32.mrf.mxu1 }
  0xf7   :  { %428 = vst.msk [vmem:[%s749_s3 + $0x8] sm:$0xf] %vm425_vm1, %v483_v7  ;;  %v388_v14 = vmax.f32 %v366_v8, 0.0  ;;  %427 = vst.msk [vmem:[%s749_s3 + $0x4] sm:$0xf] %vm425_vm1, %v482_v9  ;;  %v487_v15 = vpack.c.bf16 %v391_v10, %v391_v10  ;;  %v382_v16 = vadd.f32 %v546_v13, %v317_v6 }
  0xf8   :  { %v306_v17 = vadd.f32 %v519_v11, %v438_v39  ;;  %v521_v18 = vpop.f32.mrf.mxu0  ;;  %v373_v26 = vpop.f32.mrf.mxu1 }
  0xf9   :  { %v484_v19 = vpack.c.bf16 %v388_v14, %v388_v14  ;;  %432 = vst.msk [vmem:[%s749_s3 + $0x18] sm:$0xf] %vm425_vm1, %v487_v15  ;;  %v392_v20 = vmax.f32 %v382_v16, 0.0  ;;  %v522_v21 = vadd.f32 %v521_v18, %v520_v12 }
  0xfa   :  { %v371_v22 = vadd.f32 %v370_v5, %v306_v17 }
  0xfb   :  { %429 = vst.msk [vmem:[%s749_s3 + $0xc] sm:$0xf] %vm425_vm1, %v484_v19  ;;  %v488_v23 = vpack.c.bf16 %v392_v20, %v392_v20  ;;  %v309_v24 = vadd.f32 %v522_v21, %v438_v39 }
  0xfc   :  { %v389_v25 = vmax.f32 %v371_v22, 0.0 }
  0xfd   :  { %433 = vst.msk [vmem:[%s749_s3 + $0x1c] sm:$0xf] %vm425_vm1, %v488_v23  ;;  %v374_v27 = vadd.f32 %v373_v26, %v309_v24 }
  0xfe   :  { %v485_v28 = vpack.c.bf16 %v389_v25, %v389_v25 }
  0xff   :  { %v390_v29 = vmax.f32 %v374_v27, 0.0 }
 0x100   :  { %430 = vst.msk [vmem:[%s749_s3 + $0x10] sm:$0xf] %vm425_vm1, %v485_v28 }
 0x101   :  { %v486_v30 = vpack.c.bf16 %v390_v29, %v390_v29 }
 0x103   :  { %431 = vst.msk [vmem:[%s749_s3 + $0x14] sm:$0xf] %vm425_vm1, %v486_v30 }

// kernel: model_forward.7
= control target key start
LH: loop header
LB: loop body
LE: loop exit
PB: predicated region body
PF: predicated region fallthrough
CT: control target
= control target key end

     0   :  { %vm434_vm0 = vcmask 523264   ;;  %vm682_vm1 = vcmask 519168   ;;  %s1171_s1 = inlined_call_operand.vmem [shape: bf16[576,64], index: 1, kind: input, shape index: {}]   ;;  %s1172_s0 = inlined_call_operand.vmem [shape: bf16[64,576], index: 0, kind: input, shape index: {}]   ;;  %s1173_s2 = inlined_call_operand.vmem [shape: f32[1,64], index: 2, kind: input, shape index: {}]   ;;  %s1174_s3 = inlined_call_operand.vmem [shape: bf16[64,64], index: 3, kind: output, shape index: {}]  }
   0x1   :  { %v884_v0 = vld [vmem:[%s1171_s1 + $0x78] sm:$0xff]   ;;  %v888_v4 = vld [vmem:[%s1171_s1 + $0x70] sm:$0xff]   ;;  %v892_v8 = vld [vmem:[%s1171_s1 + $0x68] sm:$0xff]  }
   0x2   :  { %v885_v1 = vld [vmem:[%s1171_s1 + $0xf8] sm:$0xff]   ;;  %772 = vmatprep.subr.bf16.mxu0 %v884_v0  ;;  %v889_v5 = vld [vmem:[%s1171_s1 + $0xf0] sm:$0xff]   ;;  %v893_v9 = vld [vmem:[%s1171_s1 + $0xe8] sm:$0xff]  }
   0x3   :  { %v886_v2 = vld [vmem:[%s1171_s1 + $0x38] sm:$0xff]   ;;  %812 = vmatprep.subr.bf16.mxu1 %v885_v1  ;;  %v890_v6 = vld [vmem:[%s1171_s1 + $0x30] sm:$0xff]   ;;  %v894_v10 = vld [vmem:[%s1171_s1 + $0x28] sm:$0xff]  }
   0x4   :  { %v887_v3 = vld [vmem:[%s1171_s1 + $0xb8] sm:$0xff]   ;;  %773 = vmatpush3.bf16.msra.mxu0 %v886_v2  ;;  %v891_v7 = vld [vmem:[%s1171_s1 + $0xb0] sm:$0xff]   ;;  %v895_v11 = vld [vmem:[%s1171_s1 + $0xa8] sm:$0xff]  }
   0x5   :  { %813 = vmatpush3.bf16.msra.mxu1 %v887_v3  ;;  %774 = vmatprep.subr.bf16.mxu0 %v888_v4  ;;  %v896_v12 = vld [vmem:[%s1171_s1 + $0x60] sm:$0xff]   ;;  %v900_v16 = vld [vmem:[%s1171_s1 + $0x58] sm:$0xff]   ;;  %v904_v20 = vld [vmem:[%s1171_s1 + $0x50] sm:$0xff]  }
   0x6   :  { %814 = vmatprep.subr.bf16.mxu1 %v889_v5  ;;  %v897_v13 = vld [vmem:[%s1171_s1 + $0xe0] sm:$0xff]   ;;  %v901_v17 = vld [vmem:[%s1171_s1 + $0xd8] sm:$0xff]   ;;  %v905_v21 = vld [vmem:[%s1171_s1 + $0xd0] sm:$0xff]  }
   0x7   :  { %v898_v14 = vld [vmem:[%s1171_s1 + $0x20] sm:$0xff]   ;;  %v902_v18 = vld [vmem:[%s1171_s1 + $0x18] sm:$0xff]   ;;  %v906_v22 = vld [vmem:[%s1171_s1 + $0x10] sm:$0xff]  }
   0x8   :  { %775 = vmatpush3.bf16.msra.mxu0 %v890_v6  ;;  %v899_v15 = vld [vmem:[%s1171_s1 + $0xa0] sm:$0xff]   ;;  %v903_v19 = vld [vmem:[%s1171_s1 + $0x98] sm:$0xff]   ;;  %v907_v23 = vld [vmem:[%s1171_s1 + $0x90] sm:$0xff]  }
   0x9   :  { %815 = vmatpush3.bf16.msra.mxu1 %v891_v7  ;;  %776 = vmatprep.subr.bf16.mxu0 %v892_v8  ;;  %v908_v24 = vld [vmem:[%s1171_s1 + $0x48] sm:$0xff]   ;;  %v912_v28 = vld [vmem:[%s1171_s1 + $0x40] sm:$0xff]   ;;  %v922_v36 = vld [vmem:[%s1171_s1 + $0x118] sm:$0xff]  }
   0xa   :  { %816 = vmatprep.subr.bf16.mxu1 %v893_v9  ;;  %v909_v25 = vld [vmem:[%s1171_s1 + $0xc8] sm:$0xff]   ;;  %v913_v29 = vld [vmem:[%s1171_s1 + $0xc0] sm:$0xff]   ;;  %v929_v39 = vld [vmem:[%s1171_s1 + $0x110] sm:$0xff]  }
   0xb   :  { %v910_v26 = vld [vmem:[%s1171_s1 + $0x8] sm:$0xff]   ;;  %v914_v30 = vld [vmem:[%s1171_s1] sm:$0xff]   ;;  %v932_v43 = vld [vmem:[%s1172_s0 + $0x5c] ss:$20 sps:$4 sm:$0xff]  }
   0xc   :  { %777 = vmatpush3.bf16.msra.mxu0 %v894_v10  ;;  %v911_v27 = vld [vmem:[%s1171_s1 + $0x88] sm:$0xff]   ;;  %v915_v31 = vld [vmem:[%s1171_s1 + $0x80] sm:$0xff]   ;;  %v937_v48 = vld [vmem:[%s1172_s0 + $0x7c] ss:$20 sps:$4 sm:$0xff]  }
   0xd   :  { %817 = vmatpush3.bf16.msra.mxu1 %v895_v11  ;;  %778 = vmatprep.subr.bf16.mxu0 %v896_v12  ;;  %v916_v32 = vld [vmem:[%s1172_s0] ss:$20 sps:$4 sm:$0xff]   ;;  %v918_v33 = vld [vmem:[%s1172_s0 + $0x4] ss:$20 sps:$4 sm:$0xff]   ;;  %v919_v34 = vld [vmem:[%s1172_s0 + $0x8] ss:$20 sps:$4 sm:$0xff]  }
   0xe   :  { %818 = vmatprep.subr.bf16.mxu1 %v897_v13  ;;  %v921_v35 = vld [vmem:[%s1172_s0 + $0xc] ss:$20 sps:$4 sm:$0xff]   ;;  %479 = vmatprep.mubr.bf16.mxu0 %v918_v33  ;;  %v925_v38 = vld [vmem:[%s1172_s0 + $0x34] ss:$20 sps:$4 sm:$0xff]   ;;  %v928_v41 = vld [vmem:[%s1172_s0 + $0x30] ss:$20 sps:$4 sm:$0xff]  }
   0xf   :  { %544 = vmatprep.mubr.bf16.mxu1 %v921_v35  ;;  %v923_v37 = vld [vmem:[%s1172_s0 + $0x2c] ss:$20 sps:$4 sm:$0xff]   ;;  %v927_v40 = vld [vmem:[%s1172_s0 + $0x28] ss:$20 sps:$4 sm:$0xff]   ;;  %v934_v46 = vld [vmem:[%s1172_s0 + $0x50] ss:$20 sps:$4 sm:$0xff]  }
  0x10   :  { %779 = vmatpush3.bf16.msra.mxu0 %v898_v14  ;;  %v930_v42 = vld [vmem:[%s1172_s0 + $0x54] ss:$20 sps:$4 sm:$0xff]   ;;  %v943_v45 = vld [vmem:[%s1171_s1 + $0x100] sm:$0xff]   ;;  %v935_v47 = vld [vmem:[%s1172_s0 + $0x58] ss:$20 sps:$4 sm:$0xff]  }
  0x11   :  { %819 = vmatpush3.bf16.msra.mxu1 %v899_v15  ;;  %780 = vmatprep.subr.bf16.mxu0 %v900_v16  ;;  %v936_v44 = vld [vmem:[%s1171_s1 + $0x108] sm:$0xff]   ;;  %v939_v49 = vld [vmem:[%s1172_s0 + $0x84] ss:$20 sps:$4 sm:$0xff]   ;;  %v942_v51 = vld [vmem:[%s1172_s0 + $0x80] ss:$20 sps:$4 sm:$0xff]  }
  0x12   :  { %820 = vmatprep.subr.bf16.mxu1 %v901_v17  ;;  %v941_v50 = vld [vmem:[%s1172_s0 + $0x78] ss:$20 sps:$4 sm:$0xff]   ;;  %v944_v52 = vld [vmem:[%s1172_s0 + $0x10] ss:$20 sps:$4 sm:$0xff]   ;;  %v945_v53 = vld [vmem:[%s1172_s0 + $0x60] ss:$20 sps:$4 sm:$0xff]  }
  0x13   :  { %v946_v54 = vld [vmem:[%s1172_s0 + $0x38] ss:$20 sps:$4 sm:$0xff]   ;;  %v947_v55 = vld [vmem:[%s1172_s0 + $0x88] ss:$20 sps:$4 sm:$0xff]  }
  0x14   :  { %781 = vmatpush3.bf16.msra.mxu0 %v902_v18 }
  0x15   :  { %821 = vmatpush3.bf16.msra.mxu1 %v903_v19  ;;  %782 = vmatprep.subr.bf16.mxu0 %v904_v20  ;;  %v695_v19 = vld [vmem:[%s1173_s2] ss:$0 sm:$0xff] }
  0x16   :  { %822 = vmatprep.subr.bf16.mxu1 %v905_v21 }
  0x18   :  { %783 = vmatpush3.bf16.msra.mxu0 %v906_v22 }
  0x19   :  { %823 = vmatpush3.bf16.msra.mxu1 %v907_v23  ;;  %784 = vmatprep.subr.bf16.mxu0 %v908_v24 }
  0x1a   :  { %824 = vmatprep.subr.bf16.mxu1 %v909_v25 }
  0x1c   :  { %785 = vmatpush3.bf16.msra.mxu0 %v910_v26 }
  0x1d   :  { %825 = vmatpush3.bf16.msra.mxu1 %v911_v27  ;;  %786 = vmatprep.subr.bf16.mxu0 %v912_v28 }
  0x1e   :  { %826 = vmatprep.subr.bf16.mxu1 %v913_v29 }
  0x20   :  { %787 = vmatpush3.bf16.msra.mxu0 %v914_v30 }
  0x21   :  { %827 = vmatpush3.bf16.msra.mxu1 %v915_v31  ;;  %860 = vmatprep.subr.bf16.mxu0 %v922_v36 }
  0x22   :  { %876 = vmatprep.subr.bf16.mxu1 %v922_v36 }
  0x23   :  { %480 = vmatmul.mubr.bf16.vlgmr.msra.gmra.mxu0 %v916_v32 }
  0x24   :  { %545 = vmatmul.mubr.bf16.vlgmr.msra.gmra.mxu1 %v919_v34  ;;  %861 = vmatpush3.bf16.msra.mxu0 %v922_v36 }
  0x25   :  { %880 = vmatpush3.bf16.msra.mxu1 %v922_v36  ;;  %487 = vmatprep.mubr.bf16.mxu0 %v923_v37 }
  0x26   :  { %552 = vmatprep.mubr.bf16.mxu1 %v925_v38  ;;  %862 = vmatprep.subr.bf16.mxu0 %v929_v39 }
  0x27   :  { %877 = vmatprep.subr.bf16.mxu1 %v929_v39 }
  0x28   :  { %863 = vmatpush3.bf16.msra.mxu0 %v929_v39 }
  0x29   :  { %881 = vmatpush3.bf16.msra.mxu1 %v929_v39  ;;  %864 = vmatprep.subr.bf16.mxu0 %v936_v44 }
  0x2a   :  { %878 = vmatprep.subr.bf16.mxu1 %v936_v44 }
  0x2b   :  { %488 = vmatmul.mubr.bf16.gmra.mxu0 %v927_v40 }
  0x2c   :  { %553 = vmatmul.mubr.bf16.gmra.mxu1 %v928_v41  ;;  %495 = vmatprep.mubr.bf16.mxu0 %v930_v42 }
  0x2d   :  { %560 = vmatprep.mubr.bf16.mxu1 %v932_v43  ;;  %865 = vmatpush3.bf16.msra.mxu0 %v936_v44 }
  0x2e   :  { %882 = vmatpush3.bf16.msra.mxu1 %v936_v44  ;;  %866 = vmatprep.subr.bf16.mxu0 %v943_v45 }
  0x2f   :  { %879 = vmatprep.subr.bf16.mxu1 %v943_v45 }
  0x31   :  { %867 = vmatpush3.bf16.msra.mxu0 %v943_v45 }
  0x32   :  { %883 = vmatpush3.bf16.msra.mxu1 %v943_v45 }
  0x33   :  { %496 = vmatmul.mubr.bf16.gmra.mxu0 %v934_v46 }
  0x34   :  { %561 = vmatmul.mubr.bf16.gmra.mxu1 %v935_v47  ;;  %503 = vmatprep.mubr.bf16.mxu0 %v937_v48 }
  0x35   :  { %568 = vmatprep.mubr.bf16.mxu1 %v939_v49 }
  0x3b   :  { %504 = vmatmul.mubr.bf16.gmra.mxu0 %v941_v50 }
  0x3c   :  { %569 = vmatmul.mubr.bf16.gmra.mxu1 %v942_v51  ;;  %868 = vmatprep.mubr.msk.bf16.mxu0 %vm434_vm0, %v944_v52 }
  0x3d   :  { %872 = vmatprep.mubr.msk.bf16.mxu1 %vm434_vm0, %v945_v53 }
  0x43   :  { %869 = vmatmul.mubr.msk.bf16.vlgmr.msra.gmra.mxu0 %vm434_vm0, %v946_v54 }
  0x44   :  { %873 = vmatmul.mubr.msk.bf16.vlgmr.msra.gmra.mxu1 %vm434_vm0, %v947_v55 }
  0xe3   :  { %v788_v56 = vpop.f32.mrf.mxu0 }
  0xe4   :  { %v828_v57 = vpop.f32.mrf.mxu1 }
  0xe5   :  { %v789_v58 = vpop.f32.mrf.mxu0 }
  0xe6   :  { %v829_v59 = vpop.f32.mrf.mxu1  ;;  %v790_v17 = vadd.f32 %v789_v58, %v788_v56 }
  0xe7   :  { %v791_v60 = vpop.f32.mrf.mxu0  ;;  %v830_v34 = vadd.f32 %v829_v59, %v828_v57 }
  0xe8   :  { %v831_v61 = vpop.f32.mrf.mxu1  ;;  %v482_v27 = vadd.f32 %v790_v17, %v695_v19 }
  0xe9   :  { %v792_v62 = vpop.f32.mrf.mxu0 }
  0xea   :  { %v832_v63 = vpop.f32.mrf.mxu1  ;;  %v793_v28 = vadd.f32 %v792_v62, %v791_v60  ;;  %v547_v46 = vadd.f32 %v830_v34, %v482_v27 }
  0xeb   :  { %v794_v0 = vpop.f32.mrf.mxu0  ;;  %v833_v52 = vadd.f32 %v832_v63, %v831_v61 }
  0xec   :  { %v834_v1 = vpop.f32.mrf.mxu1  ;;  %v485_v43 = vadd.f32 %v793_v28, %v695_v19 }
  0xed   :  { %v795_v2 = vpop.f32.mrf.mxu0 }
  0xee   :  { %v835_v3 = vpop.f32.mrf.mxu1  ;;  %v796_v15 = vadd.f32 %v795_v2, %v794_v0 }
  0xef   :  { %v797_v4 = vpop.f32.mrf.mxu0  ;;  %v836_v30 = vadd.f32 %v835_v3, %v834_v1 }
  0xf0   :  { %v837_v5 = vpop.f32.mrf.mxu1  ;;  %v490_v23 = vadd.f32 %v796_v15, %v695_v19 }
  0xf1   :  { %v798_v6 = vpop.f32.mrf.mxu0 }
  0xf2   :  { %v838_v7 = vpop.f32.mrf.mxu1  ;;  %v799_v24 = vadd.f32 %v798_v6, %v797_v4  ;;  %v555_v41 = vadd.f32 %v836_v30, %v490_v23 }
  0xf3   :  { %v800_v8 = vpop.f32.mrf.mxu0  ;;  %v839_v47 = vadd.f32 %v838_v7, %v837_v5 }
  0xf4   :  { %v840_v9 = vpop.f32.mrf.mxu1  ;;  %v493_v38 = vadd.f32 %v799_v24, %v695_v19 }
  0xf5   :  { %v801_v10 = vpop.f32.mrf.mxu0 }
  0xf6   :  { %v841_v11 = vpop.f32.mrf.mxu1  ;;  %v802_v21 = vadd.f32 %v801_v10, %v800_v8  ;;  %v558_v60 = vadd.f32 %v839_v47, %v493_v38  ;;  %v550_v8 = vadd.f32 %v833_v52, %v485_v43 }
  0xf7   :  { %v803_v12 = vpop.f32.mrf.mxu0  ;;  %v842_v44 = vadd.f32 %v841_v11, %v840_v9 }
  0xf8   :  { %v843_v13 = vpop.f32.mrf.mxu1  ;;  %v498_v35 = vadd.f32 %v802_v21, %v695_v19 }
  0xf9   :  { %v804_v14 = vpop.f32.mrf.mxu0 }
  0xfa   :  { %v844_v16 = vpop.f32.mrf.mxu1  ;;  %v805_v36 = vadd.f32 %v804_v14, %v803_v12  ;;  %v563_v56 = vadd.f32 %v842_v44, %v498_v35 }
  0xfb   :  { %v806_v18 = vpop.f32.mrf.mxu0  ;;  %v845_v0 = vadd.f32 %v844_v16, %v843_v13 }
  0xfc   :  { %v846_v20 = vpop.f32.mrf.mxu1  ;;  %v501_v53 = vadd.f32 %v805_v36, %v695_v19 }
  0xfd   :  { %v807_v22 = vpop.f32.mrf.mxu0 }
  0xfe   :  { %v808_v25 = vadd.f32 %v807_v22, %v806_v18  ;;  %v847_v26 = vpop.f32.mrf.mxu1  ;;  %v566_v11 = vadd.f32 %v845_v0, %v501_v53 }
  0xff   :  { %v809_v29 = vpop.f32.mrf.mxu0  ;;  %v848_v32 = vadd.f32 %v847_v26, %v846_v20 }
 0x100   :  { %v506_v31 = vadd.f32 %v808_v25, %v695_v19  ;;  %v849_v33 = vpop.f32.mrf.mxu1 }
 0x101   :  { %v810_v37 = vpop.f32.mrf.mxu0 }
 0x102   :  { %v811_v39 = vadd.f32 %v810_v37, %v809_v29  ;;  %v850_v40 = vpop.f32.mrf.mxu1  ;;  %v571_v42 = vadd.f32 %v848_v32, %v506_v31 }
 0x103   :  { %v870_v45 = vpop.f32.mrf.mxu0  ;;  %v851_v49 = vadd.f32 %v850_v40, %v849_v33 }
 0x104   :  { %v509_v48 = vadd.f32 %v811_v39, %v695_v19  ;;  %v620_v50 = vadd.f32 %v870_v45, %v555_v41  ;;  %v874_v51 = vpop.f32.mrf.mxu1 }
 0x105   :  { %v636_v54 = vadd.f32 %v874_v51, %v571_v42  ;;  %v611_v55 = vpop.f32.mrf.mxu0 }
 0x106   :  { %v644_v57 = vmax.f32 %v620_v50, 0.0  ;;  %v612_v58 = vadd.f32 %v611_v55, %v547_v46  ;;  %v627_v59 = vpop.f32.mrf.mxu1  ;;  %v574_v62 = vadd.f32 %v851_v49, %v509_v48 }
 0x107   :  { %v648_v1 = vmax.f32 %v636_v54, 0.0  ;;  %v628_v2 = vadd.f32 %v627_v59, %v563_v56  ;;  %v871_v3 = vpop.f32.mrf.mxu0 }
 0x108   :  { %v766_v4 = vpack.c.bf16 %v644_v57, %v644_v57  ;;  %v642_v5 = vmax.f32 %v612_v58, 0.0  ;;  %v623_v6 = vadd.f32 %v871_v3, %v558_v60  ;;  %v875_v7 = vpop.f32.mrf.mxu1 }
 0x109   :  { %v770_v61 = vpack.c.bf16 %v648_v1, %v648_v1  ;;  %v646_v63 = vmax.f32 %v628_v2, 0.0  ;;  %v639_v9 = vadd.f32 %v875_v7, %v574_v62  ;;  %v614_v10 = vpop.f32.mrf.mxu0 }
 0x10a   :  { %685 = vst.msk [vmem:[%s1174_s3 + $0x8] sm:$0xf] %vm682_vm1, %v766_v4  ;;  %v764_v12 = vpack.c.bf16 %v642_v5, %v642_v5  ;;  %v645_v13 = vmax.f32 %v623_v6, 0.0  ;;  %v615_v14 = vadd.f32 %v614_v10, %v550_v8  ;;  %v630_v15 = vpop.f32.mrf.mxu1 }
 0x10b   :  { %689 = vst.msk [vmem:[%s1174_s3 + $0x18] sm:$0xf] %vm682_vm1, %v770_v61  ;;  %v768_v16 = vpack.c.bf16 %v646_v63, %v646_v63  ;;  %v649_v17 = vmax.f32 %v639_v9, 0.0  ;;  %v631_v18 = vadd.f32 %v630_v15, %v566_v11 }
 0x10c   :  { %683 = vst.msk [vmem:[%s1174_s3] sm:$0xf] %vm682_vm1, %v764_v12  ;;  %v767_v19 = vpack.c.bf16 %v645_v13, %v645_v13  ;;  %v643_v20 = vmax.f32 %v615_v14, 0.0 }
 0x10d   :  { %687 = vst.msk [vmem:[%s1174_s3 + $0x10] sm:$0xf] %vm682_vm1, %v768_v16  ;;  %v771_v21 = vpack.c.bf16 %v649_v17, %v649_v17  ;;  %v647_v22 = vmax.f32 %v631_v18, 0.0 }
 0x10e   :  { %686 = vst.msk [vmem:[%s1174_s3 + $0xc] sm:$0xf] %vm682_vm1, %v767_v19  ;;  %v765_v23 = vpack.c.bf16 %v643_v20, %v643_v20 }
 0x10f   :  { %690 = vst.msk [vmem:[%s1174_s3 + $0x1c] sm:$0xf] %vm682_vm1, %v771_v21  ;;  %v769_v24 = vpack.c.bf16 %v647_v22, %v647_v22 }
 0x110   :  { %684 = vst.msk [vmem:[%s1174_s3 + $0x4] sm:$0xf] %vm682_vm1, %v765_v23 }
 0x111   :  { %688 = vst.msk [vmem:[%s1174_s3 + $0x14] sm:$0xf] %vm682_vm1, %v769_v24 }

// kernel: model_forward.9
= control target key start
LH: loop header
LB: loop body
LE: loop exit
PB: predicated region body
PF: predicated region fallthrough
CT: control target
= control target key end

     0   :  { %v146_v36 = vlaneseq  ;;  %v1338_v37 = vmov 1983009808   ;;  %s1770_s1 = inlined_call_operand.vmem [shape: bf16[1024,256], index: 1, kind: input, shape index: {}]   ;;  %s1771_s0 = inlined_call_operand.vmem [shape: bf16[4,1024], index: 0, kind: input, shape index: {}]   ;;  %s1772_s2 = inlined_call_operand.vmem [shape: f32[1,256], index: 2, kind: input, shape index: {}]   ;;  %s1773_s3 = inlined_call_operand.vmem [shape: f32[4,256], index: 3, kind: output, shape index: {}]  }
   0x1   :  { %v1144_v0 = vld [vmem:[%s1770_s1 + $0x74] ss:$8 sps:$4 sm:$0xff]   ;;  %v1148_v2 = vld [vmem:[%s1770_s1 + $0x70] ss:$8 sps:$4 sm:$0xff]   ;;  %v1150_v4 = vld [vmem:[%s1770_s1 + $0x64] ss:$8 sps:$4 sm:$0xff]   ;;  %v160_v38 = vunpack.c.l.s4 %v1338_v37 }
   0x2   :  { %v1146_v1 = vld [vmem:[%s1770_s1 + $0x174] ss:$8 sps:$4 sm:$0xff]   ;;  %840 = vmatprep.subr.bf16.mxu0 %v1144_v0  ;;  %v1149_v3 = vld [vmem:[%s1770_s1 + $0x170] ss:$8 sps:$4 sm:$0xff]   ;;  %v1152_v5 = vld [vmem:[%s1770_s1 + $0x164] ss:$8 sps:$4 sm:$0xff]  }
   0x3   :  { %881 = vmatprep.subr.bf16.mxu1 %v1146_v1  ;;  %841 = vmatpush1.bf16.msra.mxu0 %v1148_v2  ;;  %v1154_v6 = vld [vmem:[%s1770_s1 + $0x60] ss:$8 sps:$4 sm:$0xff]   ;;  %v1156_v8 = vld [vmem:[%s1770_s1 + $0x54] ss:$8 sps:$4 sm:$0xff]   ;;  %v1160_v10 = vld [vmem:[%s1770_s1 + $0x50] ss:$8 sps:$4 sm:$0xff]   ;;  %v161_v43 = vunpack.c.0.s8 %v160_v38 }
   0x4   :  { %882 = vmatpush1.bf16.msra.mxu1 %v1149_v3  ;;  %842 = vmatprep.subr.bf16.mxu0 %v1150_v4  ;;  %v1155_v7 = vld [vmem:[%s1770_s1 + $0x160] ss:$8 sps:$4 sm:$0xff]   ;;  %v1158_v9 = vld [vmem:[%s1770_s1 + $0x154] ss:$8 sps:$4 sm:$0xff]   ;;  %v1161_v11 = vld [vmem:[%s1770_s1 + $0x150] ss:$8 sps:$4 sm:$0xff]  }
   0x5   :  { %883 = vmatprep.subr.bf16.mxu1 %v1152_v5  ;;  %v1162_v12 = vld [vmem:[%s1770_s1 + $0x44] ss:$8 sps:$4 sm:$0xff]   ;;  %v1166_v14 = vld [vmem:[%s1770_s1 + $0x40] ss:$8 sps:$4 sm:$0xff]   ;;  %v1168_v16 = vld [vmem:[%s1770_s1 + $0x34] ss:$8 sps:$4 sm:$0xff]  }
   0x6   :  { %v1164_v13 = vld [vmem:[%s1770_s1 + $0x144] ss:$8 sps:$4 sm:$0xff]   ;;  %v1167_v15 = vld [vmem:[%s1770_s1 + $0x140] ss:$8 sps:$4 sm:$0xff]   ;;  %v1170_v17 = vld [vmem:[%s1770_s1 + $0x134] ss:$8 sps:$4 sm:$0xff]  }
   0x7   :  { %843 = vmatpush1.bf16.msra.mxu0 %v1154_v6  ;;  %v1172_v18 = vld [vmem:[%s1770_s1 + $0x30] ss:$8 sps:$4 sm:$0xff]   ;;  %v1174_v20 = vld [vmem:[%s1770_s1 + $0x24] ss:$8 sps:$4 sm:$0xff]   ;;  %v1178_v22 = vld [vmem:[%s1770_s1 + $0x20] ss:$8 sps:$4 sm:$0xff]  }
   0x8   :  { %884 = vmatpush1.bf16.msra.mxu1 %v1155_v7  ;;  %844 = vmatprep.subr.bf16.mxu0 %v1156_v8  ;;  %v1173_v19 = vld [vmem:[%s1770_s1 + $0x130] ss:$8 sps:$4 sm:$0xff]   ;;  %v1176_v21 = vld [vmem:[%s1770_s1 + $0x124] ss:$8 sps:$4 sm:$0xff]   ;;  %v1179_v23 = vld [vmem:[%s1770_s1 + $0x120] ss:$8 sps:$4 sm:$0xff]  }
   0x9   :  { %885 = vmatprep.subr.bf16.mxu1 %v1158_v9  ;;  %v1180_v24 = vld [vmem:[%s1770_s1 + $0x14] ss:$8 sps:$4 sm:$0xff]   ;;  %v1184_v26 = vld [vmem:[%s1770_s1 + $0x10] ss:$8 sps:$4 sm:$0xff]   ;;  %v1186_v28 = vld [vmem:[%s1770_s1 + $0x4] ss:$8 sps:$4 sm:$0xff]  }
   0xa   :  { %v1182_v25 = vld [vmem:[%s1770_s1 + $0x114] ss:$8 sps:$4 sm:$0xff]   ;;  %v1185_v27 = vld [vmem:[%s1770_s1 + $0x110] ss:$8 sps:$4 sm:$0xff]   ;;  %v1188_v29 = vld [vmem:[%s1770_s1 + $0x104] ss:$8 sps:$4 sm:$0xff]  }
   0xb   :  { %845 = vmatpush1.bf16.msra.mxu0 %v1160_v10  ;;  %v1190_v30 = vld [vmem:[%s1770_s1] ss:$8 sps:$4 sm:$0xff]   ;;  %v1192_v32 = vld [vmem:[%s1770_s1 + $0xf4] ss:$8 sps:$4 sm:$0xff]   ;;  %v1196_v34 = vld [vmem:[%s1770_s1 + $0xf0] ss:$8 sps:$4 sm:$0xff]  }
   0xc   :  { %886 = vmatpush1.bf16.msra.mxu1 %v1161_v11  ;;  %846 = vmatprep.subr.bf16.mxu0 %v1162_v12  ;;  %v1191_v31 = vld [vmem:[%s1770_s1 + $0x100] ss:$8 sps:$4 sm:$0xff]   ;;  %v1194_v33 = vld [vmem:[%s1770_s1 + $0x1f4] ss:$8 sps:$4 sm:$0xff]   ;;  %v1197_v35 = vld [vmem:[%s1770_s1 + $0x1f0] ss:$8 sps:$4 sm:$0xff]  }
   0xd   :  { %887 = vmatprep.subr.bf16.mxu1 %v1164_v13  ;;  %v1198_v39 = vld [vmem:[%s1770_s1 + $0xe4] ss:$8 sps:$4 sm:$0xff]   ;;  %v1202_v41 = vld [vmem:[%s1770_s1 + $0xe0] ss:$8 sps:$4 sm:$0xff]   ;;  %v1476_v42 = vshrl.u32 %v146_v36, 7 }
   0xe   :  { %v1200_v40 = vld [vmem:[%s1770_s1 + $0x1e4] ss:$8 sps:$4 sm:$0xff]   ;;  %v1203_v44 = vld [vmem:[%s1770_s1 + $0x1e0] ss:$8 sps:$4 sm:$0xff]   ;;  %v1204_v45 = vld [vmem:[%s1770_s1 + $0xd4] ss:$8 sps:$4 sm:$0xff]  }
   0xf   :  { %847 = vmatpush1.bf16.msra.mxu0 %v1166_v14  ;;  %v1206_v46 = vld [vmem:[%s1770_s1 + $0x1d4] ss:$8 sps:$4 sm:$0xff]   ;;  %v1208_v47 = vld [vmem:[%s1770_s1 + $0xd0] ss:$8 sps:$4 sm:$0xff]   ;;  %v164_v49 = vsub.s32 %v161_v43, %v1476_v42  ;;  %v1210_v50 = vld [vmem:[%s1770_s1 + $0xc4] ss:$8 sps:$4 sm:$0xff]  }
  0x10   :  { %888 = vmatpush1.bf16.msra.mxu1 %v1167_v15  ;;  %848 = vmatprep.subr.bf16.mxu0 %v1168_v16  ;;  %v1209_v48 = vld [vmem:[%s1770_s1 + $0x1d0] ss:$8 sps:$4 sm:$0xff]   ;;  %v1212_v51 = vld [vmem:[%s1770_s1 + $0x1c4] ss:$8 sps:$4 sm:$0xff]   ;;  %v1214_v55 = vld [vmem:[%s1770_s1 + $0xc0] ss:$8 sps:$4 sm:$0xff]  }
  0x11   :  { %889 = vmatprep.subr.bf16.mxu1 %v1170_v17  ;;  %v14_v52 = vld [vmem:[%s1771_s0] sm:$0xff]  ;;  %v1216_v57 = vld [vmem:[%s1770_s1 + $0xb4] ss:$8 sps:$4 sm:$0xff]   ;;  %v1220_v62 = vld [vmem:[%s1770_s1 + $0xb0] ss:$8 sps:$4 sm:$0xff]  }
  0x12   :  { %v165_v53 = vrot.slane %v14_v52, %v164_v49  ;;  %v158_v54 = vcombine.high %v14_v52, %v14_v52  ;;  %v1215_v56 = vld [vmem:[%s1770_s1 + $0x1c0] ss:$8 sps:$4 sm:$0xff]   ;;  %v1218_v58 = vld [vmem:[%s1770_s1 + $0x1b4] ss:$8 sps:$4 sm:$0xff]   ;;  %v1221_v63 = vld [vmem:[%s1770_s1 + $0x1b0] ss:$8 sps:$4 sm:$0xff]  }
  0x13   :  { %849 = vmatpush1.bf16.msra.mxu0 %v1172_v18  ;;  %v1222_v0 = vld [vmem:[%s1770_s1 + $0xa4] ss:$8 sps:$4 sm:$0xff]   ;;  %v1226_v2 = vld [vmem:[%s1770_s1 + $0xa0] ss:$8 sps:$4 sm:$0xff]   ;;  %v1228_v4 = vld [vmem:[%s1770_s1 + $0x94] ss:$8 sps:$4 sm:$0xff]  }
  0x14   :  { %890 = vmatpush1.bf16.msra.mxu1 %v1173_v19  ;;  %850 = vmatprep.subr.bf16.mxu0 %v1174_v20  ;;  %v173_v59 = vcombine.high %v165_v53, %v165_v53  ;;  %v172_v60 = vrot.slane %v158_v54, %v164_v49  ;;  %v1224_v1 = vld [vmem:[%s1770_s1 + $0x1a4] ss:$8 sps:$4 sm:$0xff]   ;;  %v1227_v3 = vld [vmem:[%s1770_s1 + $0x1a0] ss:$8 sps:$4 sm:$0xff]   ;;  %v1230_v5 = vld [vmem:[%s1770_s1 + $0x194] ss:$8 sps:$4 sm:$0xff]  }
  0x15   :  { %891 = vmatprep.subr.bf16.mxu1 %v1176_v21  ;;  %v15_v6 = vld [vmem:[%s1771_s0 + $0x8] sm:$0xff]  ;;  %v1232_v7 = vld [vmem:[%s1770_s1 + $0x90] ss:$8 sps:$4 sm:$0xff]   ;;  %v1244_v14 = vld [vmem:[%s1770_s1 + $0x274] ss:$8 sps:$4 sm:$0xff]  }
  0x16   :  { %872 = vmatprep.mubr.bf16.mxu0 %v173_v59  ;;  %v174_v61 = vcombine.high %v172_v60, %v172_v60  ;;  %v1233_v8 = vld [vmem:[%s1770_s1 + $0x190] ss:$8 sps:$4 sm:$0xff]   ;;  %v1234_v9 = vld [vmem:[%s1770_s1 + $0x84] ss:$8 sps:$4 sm:$0xff]   ;;  %v175_v11 = vcombine.high %v15_v6, %v15_v6  ;;  %v1238_v12 = vld [vmem:[%s1770_s1 + $0x80] ss:$8 sps:$4 sm:$0xff]   ;;  %v1566_v16 = vrot.slane %v15_v6, %v164_v49 }
  0x17   :  { %851 = vmatpush1.bf16.msra.mxu0 %v1178_v22  ;;  %v1236_v10 = vld [vmem:[%s1770_s1 + $0x184] ss:$8 sps:$4 sm:$0xff]   ;;  %v1239_v13 = vld [vmem:[%s1770_s1 + $0x180] ss:$8 sps:$4 sm:$0xff]   ;;  %v1247_v15 = vld [vmem:[%s1770_s1 + $0x374] ss:$8 sps:$4 sm:$0xff]  }
  0x18   :  { %892 = vmatpush1.bf16.msra.mxu1 %v1179_v23  ;;  %852 = vmatprep.subr.bf16.mxu0 %v1180_v24  ;;  %v1568_v17 = vrot.slane %v175_v11, %v164_v49  ;;  %v1242_v18 = vld [vmem:[%s1770_s1 + $0x270] ss:$8 sps:$4 sm:$0xff]   ;;  %v1250_v20 = vld [vmem:[%s1770_s1 + $0x264] ss:$8 sps:$4 sm:$0xff]   ;;  %v190_v22 = vcombine.high %v1566_v16, %v1566_v16  ;;  %v1248_v24 = vld [vmem:[%s1770_s1 + $0x260] ss:$8 sps:$4 sm:$0xff]  }
  0x19   :  { %893 = vmatprep.subr.bf16.mxu1 %v1182_v25  ;;  %913 = vmatprep.mubr.bf16.mxu1 %v174_v61  ;;  %v1245_v19 = vld [vmem:[%s1770_s1 + $0x370] ss:$8 sps:$4 sm:$0xff]   ;;  %v1253_v21 = vld [vmem:[%s1770_s1 + $0x364] ss:$8 sps:$4 sm:$0xff]   ;;  %v1251_v25 = vld [vmem:[%s1770_s1 + $0x360] ss:$8 sps:$4 sm:$0xff]  }
  0x1a   :  { %v191_v23 = vcombine.high %v1568_v17, %v1568_v17  ;;  %v1266_v36 = vld [vmem:[%s1770_s1 + $0x230] ss:$8 sps:$4 sm:$0xff]   ;;  %v1274_v38 = vld [vmem:[%s1770_s1 + $0x224] ss:$8 sps:$4 sm:$0xff]   ;;  %v1280_v43 = vld [vmem:[%s1770_s1 + $0x214] ss:$8 sps:$4 sm:$0xff]  }
  0x1b   :  { %853 = vmatpush1.bf16.msra.mxu0 %v1184_v26  ;;  %v1256_v26 = vld [vmem:[%s1770_s1 + $0x254] ss:$8 sps:$4 sm:$0xff]   ;;  %v1269_v37 = vld [vmem:[%s1770_s1 + $0x330] ss:$8 sps:$4 sm:$0xff]   ;;  %v1284_v49 = vld [vmem:[%s1770_s1 + $0x200] ss:$8 sps:$4 sm:$0xff]  }
  0x1c   :  { %894 = vmatpush1.bf16.msra.mxu1 %v1185_v27  ;;  %854 = vmatprep.subr.bf16.mxu0 %v1186_v28  ;;  %v1259_v27 = vld [vmem:[%s1770_s1 + $0x354] ss:$8 sps:$4 sm:$0xff]   ;;  %v1254_v28 = vld [vmem:[%s1770_s1 + $0x250] ss:$8 sps:$4 sm:$0xff]  }
  0x1d   :  { %895 = vmatprep.subr.bf16.mxu1 %v1188_v29  ;;  %v1257_v29 = vld [vmem:[%s1770_s1 + $0x350] ss:$8 sps:$4 sm:$0xff]   ;;  %v1295_v52 = vld [vmem:[%s1770_s1 + $0x3f4] ss:$8 sps:$4 sm:$0xff]  }
  0x1e   :  { %v1293_v54 = vld [vmem:[%s1770_s1 + $0x3f0] ss:$8 sps:$4 sm:$0xff]   ;;  %v1304_v59 = vld [vmem:[%s1770_s1 + $0x2d4] ss:$8 sps:$4 sm:$0xff]  }
  0x1f   :  { %855 = vmatpush1.bf16.msra.mxu0 %v1190_v30  ;;  %v1262_v30 = vld [vmem:[%s1770_s1 + $0x244] ss:$8 sps:$4 sm:$0xff]   ;;  %v1302_v61 = vld [vmem:[%s1770_s1 + $0x2d0] ss:$8 sps:$4 sm:$0xff]   ;;  %v1328_v11 = vld [vmem:[%s1770_s1 + $0x294] ss:$8 sps:$4 sm:$0xff]  }
  0x20   :  { %896 = vmatpush1.bf16.msra.mxu1 %v1191_v31  ;;  %856 = vmatprep.subr.bf16.mxu0 %v1192_v32  ;;  %v1265_v31 = vld [vmem:[%s1770_s1 + $0x344] ss:$8 sps:$4 sm:$0xff]   ;;  %v1260_v32 = vld [vmem:[%s1770_s1 + $0x240] ss:$8 sps:$4 sm:$0xff]   ;;  %v1317_v6 = vld [vmem:[%s1770_s1 + $0x3b0] ss:$8 sps:$4 sm:$0xff]  }
  0x21   :  { %897 = vmatprep.subr.bf16.mxu1 %v1194_v33  ;;  %v1263_v33 = vld [vmem:[%s1770_s1 + $0x340] ss:$8 sps:$4 sm:$0xff]  }
  0x23   :  { %857 = vmatpush2.bf16.msra.mxu0 %v1196_v34  ;;  %v1268_v34 = vld [vmem:[%s1770_s1 + $0x234] ss:$8 sps:$4 sm:$0xff]  }
  0x24   :  { %898 = vmatpush2.bf16.msra.mxu1 %v1197_v35  ;;  %858 = vmatprep.subr.bf16.mxu0 %v1198_v39  ;;  %v1271_v35 = vld [vmem:[%s1770_s1 + $0x334] ss:$8 sps:$4 sm:$0xff]   ;;  %v1277_v39 = vld [vmem:[%s1770_s1 + $0x324] ss:$8 sps:$4 sm:$0xff]  }
  0x25   :  { %899 = vmatprep.subr.bf16.mxu1 %v1200_v40  ;;  %v1272_v40 = vld [vmem:[%s1770_s1 + $0x220] ss:$8 sps:$4 sm:$0xff]  }
  0x27   :  { %859 = vmatpush2.bf16.msra.mxu0 %v1202_v41  ;;  %v1275_v41 = vld [vmem:[%s1770_s1 + $0x320] ss:$8 sps:$4 sm:$0xff]  }
  0x28   :  { %900 = vmatpush2.bf16.msra.mxu1 %v1203_v44  ;;  %860 = vmatprep.subr.bf16.mxu0 %v1204_v45  ;;  %v1283_v44 = vld [vmem:[%s1770_s1 + $0x314] ss:$8 sps:$4 sm:$0xff]   ;;  %v1278_v45 = vld [vmem:[%s1770_s1 + $0x210] ss:$8 sps:$4 sm:$0xff]  }
  0x29   :  { %901 = vmatprep.subr.bf16.mxu1 %v1206_v46  ;;  %v1281_v46 = vld [vmem:[%s1770_s1 + $0x310] ss:$8 sps:$4 sm:$0xff]  }
  0x2b   :  { %861 = vmatpush2.bf16.msra.mxu0 %v1208_v47  ;;  %v1286_v47 = vld [vmem:[%s1770_s1 + $0x204] ss:$8 sps:$4 sm:$0xff]  }
  0x2c   :  { %902 = vmatpush2.bf16.msra.mxu1 %v1209_v48  ;;  %862 = vmatprep.subr.bf16.mxu0 %v1210_v50  ;;  %v1289_v48 = vld [vmem:[%s1770_s1 + $0x304] ss:$8 sps:$4 sm:$0xff]   ;;  %v1287_v50 = vld [vmem:[%s1770_s1 + $0x300] ss:$8 sps:$4 sm:$0xff]  }
  0x2d   :  { %903 = vmatprep.subr.bf16.mxu1 %v1212_v51  ;;  %v1292_v51 = vld [vmem:[%s1770_s1 + $0x2f4] ss:$8 sps:$4 sm:$0xff]  }
  0x2f   :  { %863 = vmatpush2.bf16.msra.mxu0 %v1214_v55  ;;  %v1298_v55 = vld [vmem:[%s1770_s1 + $0x2e4] ss:$8 sps:$4 sm:$0xff]  }
  0x30   :  { %904 = vmatpush2.bf16.msra.mxu1 %v1215_v56  ;;  %864 = vmatprep.subr.bf16.mxu0 %v1216_v57  ;;  %v1301_v56 = vld [vmem:[%s1770_s1 + $0x3e4] ss:$8 sps:$4 sm:$0xff]   ;;  %v1296_v57 = vld [vmem:[%s1770_s1 + $0x2e0] ss:$8 sps:$4 sm:$0xff]  }
  0x31   :  { %905 = vmatprep.subr.bf16.mxu1 %v1218_v58  ;;  %v1299_v58 = vld [vmem:[%s1770_s1 + $0x3e0] ss:$8 sps:$4 sm:$0xff]  }
  0x33   :  { %865 = vmatpush2.bf16.msra.mxu0 %v1220_v62  ;;  %v1305_v62 = vld [vmem:[%s1770_s1 + $0x3d0] ss:$8 sps:$4 sm:$0xff]  }
  0x34   :  { %906 = vmatpush2.bf16.msra.mxu1 %v1221_v63  ;;  %866 = vmatprep.subr.bf16.mxu0 %v1222_v0  ;;  %v1310_v63 = vld [vmem:[%s1770_s1 + $0x2c4] ss:$8 sps:$4 sm:$0xff]  }
  0x35   :  { %907 = vmatprep.subr.bf16.mxu1 %v1224_v1  ;;  %v1313_v0 = vld [vmem:[%s1770_s1 + $0x3c4] ss:$8 sps:$4 sm:$0xff]   ;;  %v1308_v1 = vld [vmem:[%s1770_s1 + $0x2c0] ss:$8 sps:$4 sm:$0xff]  }
  0x37   :  { %867 = vmatpush2.bf16.msra.mxu0 %v1226_v2  ;;  %v1311_v2 = vld [vmem:[%s1770_s1 + $0x3c0] ss:$8 sps:$4 sm:$0xff]  }
  0x38   :  { %908 = vmatpush2.bf16.msra.mxu1 %v1227_v3  ;;  %868 = vmatprep.subr.bf16.mxu0 %v1228_v4  ;;  %v1316_v3 = vld [vmem:[%s1770_s1 + $0x2b4] ss:$8 sps:$4 sm:$0xff]  }
  0x39   :  { %909 = vmatprep.subr.bf16.mxu1 %v1230_v5  ;;  %v1319_v4 = vld [vmem:[%s1770_s1 + $0x3b4] ss:$8 sps:$4 sm:$0xff]   ;;  %v1314_v5 = vld [vmem:[%s1770_s1 + $0x2b0] ss:$8 sps:$4 sm:$0xff]  }
  0x3b   :  { %869 = vmatpush2.bf16.msra.mxu0 %v1232_v7  ;;  %v1322_v7 = vld [vmem:[%s1770_s1 + $0x2a4] ss:$8 sps:$4 sm:$0xff]  }
  0x3c   :  { %910 = vmatpush2.bf16.msra.mxu1 %v1233_v8  ;;  %870 = vmatprep.subr.bf16.mxu0 %v1234_v9  ;;  %v1325_v8 = vld [vmem:[%s1770_s1 + $0x3a4] ss:$8 sps:$4 sm:$0xff]   ;;  %v1320_v9 = vld [vmem:[%s1770_s1 + $0x2a0] ss:$8 sps:$4 sm:$0xff]  }
  0x3d   :  { %911 = vmatprep.subr.bf16.mxu1 %v1236_v10  ;;  %v1323_v10 = vld [vmem:[%s1770_s1 + $0x3a0] ss:$8 sps:$4 sm:$0xff]  }
  0x3f   :  { %871 = vmatpush2.bf16.msra.mxu0 %v1238_v12  ;;  %v1331_v12 = vld [vmem:[%s1770_s1 + $0x394] ss:$8 sps:$4 sm:$0xff]  }
  0x40   :  { %912 = vmatpush2.bf16.msra.mxu1 %v1239_v13  ;;  %922 = vmatprep.subr.bf16.mxu0 %v1244_v14  ;;  %v1326_v13 = vld [vmem:[%s1770_s1 + $0x290] ss:$8 sps:$4 sm:$0xff]  }
  0x41   :  { %963 = vmatprep.subr.bf16.mxu1 %v1247_v15  ;;  %v1329_v14 = vld [vmem:[%s1770_s1 + $0x390] ss:$8 sps:$4 sm:$0xff]   ;;  %v1334_v15 = vld [vmem:[%s1770_s1 + $0x284] ss:$8 sps:$4 sm:$0xff]  }
  0x42   :  { %873 = vmatmul.mubr.bf16.vlgmr.msra.gmra.mxu0 %v165_v53  ;;  %v1290_v53 = vld [vmem:[%s1770_s1 + $0x2f0] ss:$8 sps:$4 sm:$0xff]  }
  0x43   :  { %914 = vmatmul.mubr.bf16.vlgmr.msra.gmra.mxu1 %v172_v60  ;;  %923 = vmatpush1.bf16.msra.mxu0 %v1242_v18  ;;  %v1307_v60 = vld [vmem:[%s1770_s1 + $0x3d4] ss:$8 sps:$4 sm:$0xff]   ;;  %v1337_v18 = vld [vmem:[%s1770_s1 + $0x384] ss:$8 sps:$4 sm:$0xff]  }
  0x44   :  { %964 = vmatpush1.bf16.msra.mxu1 %v1245_v19  ;;  %924 = vmatprep.subr.bf16.mxu0 %v1250_v20  ;;  %v1332_v19 = vld [vmem:[%s1770_s1 + $0x280] ss:$8 sps:$4 sm:$0xff]  }
  0x45   :  { %965 = vmatprep.subr.bf16.mxu1 %v1253_v21  ;;  %954 = vmatprep.mubr.bf16.mxu0 %v190_v22  ;;  %v1335_v20 = vld [vmem:[%s1770_s1 + $0x380] ss:$8 sps:$4 sm:$0xff]  }
  0x46   :  { %995 = vmatprep.mubr.bf16.mxu1 %v191_v23 }
  0x47   :  { %925 = vmatpush1.bf16.msra.mxu0 %v1248_v24 }
  0x48   :  { %966 = vmatpush1.bf16.msra.mxu1 %v1251_v25  ;;  %926 = vmatprep.subr.bf16.mxu0 %v1256_v26 }
  0x49   :  { %967 = vmatprep.subr.bf16.mxu1 %v1259_v27 }
  0x4b   :  { %927 = vmatpush1.bf16.msra.mxu0 %v1254_v28 }
  0x4c   :  { %968 = vmatpush1.bf16.msra.mxu1 %v1257_v29  ;;  %928 = vmatprep.subr.bf16.mxu0 %v1262_v30  ;;  %v148_v29 = vsub.s32 0, %v1476_v42  ;;  %v144_v30 = vld [vmem:[%s1772_s2] sm:$0x3] }
  0x4d   :  { %969 = vmatprep.subr.bf16.mxu1 %v1265_v31  ;;  %v152_v31 = vsub.s32 1, %v1476_v42 }
  0x4f   :  { %929 = vmatpush1.bf16.msra.mxu0 %v1260_v32  ;;  %v149_v32 = vrot.slane %v144_v30, %v148_v29 }
  0x50   :  { %970 = vmatpush1.bf16.msra.mxu1 %v1263_v33  ;;  %930 = vmatprep.subr.bf16.mxu0 %v1268_v34 }
  0x51   :  { %971 = vmatprep.subr.bf16.mxu1 %v1271_v35 }
  0x53   :  { %931 = vmatpush1.bf16.msra.mxu0 %v1266_v36 }
  0x54   :  { %972 = vmatpush1.bf16.msra.mxu1 %v1269_v37  ;;  %932 = vmatprep.subr.bf16.mxu0 %v1274_v38 }
  0x55   :  { %973 = vmatprep.subr.bf16.mxu1 %v1277_v39 }
  0x57   :  { %933 = vmatpush1.bf16.msra.mxu0 %v1272_v40 }
  0x58   :  { %974 = vmatpush1.bf16.msra.mxu1 %v1275_v41  ;;  %934 = vmatprep.subr.bf16.mxu0 %v1280_v43 }
  0x59   :  { %975 = vmatprep.subr.bf16.mxu1 %v1283_v44 }
  0x5b   :  { %935 = vmatpush1.bf16.msra.mxu0 %v1278_v45 }
  0x5c   :  { %976 = vmatpush1.bf16.msra.mxu1 %v1281_v46  ;;  %936 = vmatprep.subr.bf16.mxu0 %v1286_v47 }
  0x5d   :  { %977 = vmatprep.subr.bf16.mxu1 %v1289_v48 }
  0x5f   :  { %937 = vmatpush1.bf16.msra.mxu0 %v1284_v49 }
  0x60   :  { %978 = vmatpush1.bf16.msra.mxu1 %v1287_v50  ;;  %938 = vmatprep.subr.bf16.mxu0 %v1292_v51 }
  0x61   :  { %979 = vmatprep.subr.bf16.mxu1 %v1295_v52 }
  0x63   :  { %939 = vmatpush2.bf16.msra.mxu0 %v1290_v53 }
  0x64   :  { %980 = vmatpush2.bf16.msra.mxu1 %v1293_v54  ;;  %940 = vmatprep.subr.bf16.mxu0 %v1298_v55 }
  0x65   :  { %981 = vmatprep.subr.bf16.mxu1 %v1301_v56 }
  0x67   :  { %941 = vmatpush2.bf16.msra.mxu0 %v1296_v57 }
  0x68   :  { %982 = vmatpush2.bf16.msra.mxu1 %v1299_v58  ;;  %942 = vmatprep.subr.bf16.mxu0 %v1304_v59 }
  0x69   :  { %983 = vmatprep.subr.bf16.mxu1 %v1307_v60 }
  0x6b   :  { %943 = vmatpush2.bf16.msra.mxu0 %v1302_v61 }
  0x6c   :  { %984 = vmatpush2.bf16.msra.mxu1 %v1305_v62  ;;  %944 = vmatprep.subr.bf16.mxu0 %v1310_v63 }
  0x6d   :  { %985 = vmatprep.subr.bf16.mxu1 %v1313_v0 }
  0x6f   :  { %945 = vmatpush2.bf16.msra.mxu0 %v1308_v1 }
  0x70   :  { %986 = vmatpush2.bf16.msra.mxu1 %v1311_v2  ;;  %946 = vmatprep.subr.bf16.mxu0 %v1316_v3 }
  0x71   :  { %987 = vmatprep.subr.bf16.mxu1 %v1319_v4 }
  0x73   :  { %947 = vmatpush2.bf16.msra.mxu0 %v1314_v5 }
  0x74   :  { %988 = vmatpush2.bf16.msra.mxu1 %v1317_v6  ;;  %948 = vmatprep.subr.bf16.mxu0 %v1322_v7 }
  0x75   :  { %989 = vmatprep.subr.bf16.mxu1 %v1325_v8 }
  0x77   :  { %949 = vmatpush2.bf16.msra.mxu0 %v1320_v9 }
  0x78   :  { %990 = vmatpush2.bf16.msra.mxu1 %v1323_v10  ;;  %950 = vmatprep.subr.bf16.mxu0 %v1328_v11 }
  0x79   :  { %991 = vmatprep.subr.bf16.mxu1 %v1331_v12 }
  0x7b   :  { %951 = vmatpush2.bf16.msra.mxu0 %v1326_v13 }
  0x7c   :  { %992 = vmatpush2.bf16.msra.mxu1 %v1329_v14  ;;  %952 = vmatprep.subr.bf16.mxu0 %v1334_v15 }
  0x7d   :  { %993 = vmatprep.subr.bf16.mxu1 %v1337_v18 }
  0x7f   :  { %953 = vmatpush2.bf16.msra.mxu0 %v1332_v19 }
  0x80   :  { %994 = vmatpush2.bf16.msra.mxu1 %v1335_v20 }
  0x82   :  { %955 = vmatmul.mubr.bf16.vlgmr.msra.gmra.mxu0 %v1566_v16  ;;  %v153_v16 = vrot.slane %v144_v30, %v152_v31 }
  0x83   :  { %996 = vmatmul.mubr.bf16.vlgmr.msra.gmra.mxu1 %v1568_v17 }
 0x102   :  { %v874_v21 = vpop.f32.mrf.mxu0 }
 0x103   :  { %v915_v22 = vpop.f32.mrf.mxu1  ;;  %v875_v33 = vadd.f32 %v874_v21, %v149_v32 }
 0x104   :  { %v876_v23 = vpop.f32.mrf.mxu0 }
 0x105   :  { %v917_v24 = vpop.f32.mrf.mxu1  ;;  %v877_v17 = vadd.f32 %v876_v23, %v153_v16  ;;  %v916_v34 = vadd.f32 %v915_v22, %v875_v33 }
 0x106   :  { %v878_v25 = vpop.f32.mrf.mxu0 }
 0x107   :  { %v919_v26 = vpop.f32.mrf.mxu1  ;;  %v918_v37 = vadd.f32 %v917_v24, %v877_v17 }
 0x108   :  { %v879_v27 = vpop.f32.mrf.mxu0 }
 0x109   :  { %v920_v28 = vpop.f32.mrf.mxu1 }
 0x142   :  { %v956_v35 = vpop.f32.mrf.mxu0 }
 0x143   :  { %v997_v36 = vpop.f32.mrf.mxu1  ;;  %v957_v38 = vadd.f32 %v956_v35, %v916_v34 }
 0x144   :  { %v958_v39 = vpop.f32.mrf.mxu0 }
 0x145   :  { %v999_v40 = vpop.f32.mrf.mxu1  ;;  %v998_v41 = vadd.f32 %v997_v36, %v957_v38  ;;  %v959_v43 = vadd.f32 %v958_v39, %v918_v37 }
 0x146   :  { %v960_v44 = vpop.f32.mrf.mxu0 }
 0x147   :  { %v1001_v45 = vpop.f32.mrf.mxu1  ;;  %v1000_v46 = vadd.f32 %v999_v40, %v959_v43  ;;  %v1004_v49 = vmax.f32 %v998_v41, 0.0 }
 0x148   :  { %v961_v47 = vpop.f32.mrf.mxu0 }
 0x149   :  { %v1002_v48 = vpop.f32.mrf.mxu1  ;;  %v1005_v42 = vmax.f32 %v1000_v46, 0.0 }
 0x14b   :  { %v1008_v50 = vcombine.low %v1004_v49, %v1005_v42 }
 0x14d   :  { %1010 = vst [vmem:[%s1773_s3] sm:$0xff] %v1008_v50 }

</bundles_post_ra>
